<compile_context>
chip_gen: v6e
topology: v6e:2x2x1
jax: 0.10.0
libtpu: 0.0.40
codegen_flags: <defaults>
</compile_context>

<pallas_src>
import functools

import jax
import jax.numpy as jnp
from jax.experimental import pallas as pl
from jax.experimental.pallas import tpu as pltpu

_BN_EPS = 1e-5
_ADAIN_EPS = 1e-5
_NEG_PAD = -1e30  # AdaIN scale is always > 0, so pad -> huge negative -> ReLU -> 0 in-kernel


def _conv_kernel(x_ref, w_ref, osc_ref, osh_ref, *rest,
                 KH, KW, TH, Wo, Cin, flat_input, has_in_act, has_residual,
                 apply_relu, emit_stats):
    """Fused [input affine+relu] + conv-as-one-matmul + affine + [residual] + [relu] + [stats].

    x_ref:   (1,1,TH+KH-1,Wp,Cin) padded row-tile   (or (1,1,P,C) when flat_input)
    w_ref:   (KH*KW*Cin, Cout)
    osc/osh: (1, Cout)        output affine (folded BN, or identity)
    isc/ish: (1, 1, Cin)      optional per-(batch, channel) input affine (AdaIN), + ReLU
    res:     (1, 1, P, Cout)  optional residual
    out:     (1, 1, P, Cout)
    stats:   (1, 1, 2, Cout)  optional [sum; sum of squares] over the P rows of this tile
    """
    rest = list(rest)
    if has_in_act:
        isc_ref = rest.pop(0)
        ish_ref = rest.pop(0)
    if has_residual:
        res_ref = rest.pop(0)
    out_ref = rest.pop(0)
    if emit_stats:
        stats_ref = rest.pop(0)

    P = TH * Wo

    if flat_input:
        a = x_ref[0, 0]                                            # (P, C)
        if has_in_act:
            af = a.astype(jnp.float32) * isc_ref[0] + ish_ref[0]
            a = jnp.maximum(af, 0.0).astype(a.dtype)
    else:
        xp = x_ref[0, 0]                                           # (TH+KH-1, Wp, Cin)
        if has_in_act:
            xf = xp.astype(jnp.float32) * isc_ref[...] + ish_ref[...]
            xp = jnp.maximum(xf, 0.0).astype(xp.dtype)             # pad rows -> 0 here
        # slice the K shifted taps in-kernel and fold them into the contraction dim
        taps = [xp[kh:kh + TH, kw:kw + Wo, :] for kh in range(KH) for kw in range(KW)]
        a = jnp.concatenate(taps, axis=-1) if len(taps) > 1 else taps[0]   # (TH, Wo, K*Cin)
        a = a.reshape(P, KH * KW * Cin)

    y = jnp.dot(a, w_ref[...], preferred_element_type=jnp.float32)        # one MXU matmul
    y = y * osc_ref[...] + osh_ref[...]
    if has_residual:
        y = y + res_ref[0, 0].astype(jnp.float32)
    if apply_relu:
        y = jnp.maximum(y, 0.0)
    if emit_stats:
        # per-tile channel moments for AdaIN (final mean/var combined across tiles in JAX)
        stats_ref[0, 0] = jnp.concatenate(
            [jnp.sum(y, axis=0, keepdims=True),
             jnp.sum(y * y, axis=0, keepdims=True)], axis=0)
    out_ref[0, 0] = y.astype(out_ref.dtype)


def _pick_row_tile(Ho, Wo, target_rows=2048):
    """Largest divisor TH of Ho such that TH*Wo <= target_rows (>=1)."""
    cap = max(1, target_rows // max(Wo, 1))
    th = 1
    for d in range(1, Ho + 1):
        if Ho % d == 0 and d <= cap:
            th = d
    return th


def conv_bn_pallas(x_nhwc, w_oihw, *, stride=1, padding=0,
                   out_scale=None, out_shift=None,
                   in_scale=None, in_shift=None, pad_value=0.0,
                   residual=None, relu=False, emit_stats=False,
                   compute_dtype=jnp.bfloat16, out_dtype=None,
                   row_tile=None):
    """y = affine_out(conv2d(relu(affine_in(x)), w)) [+residual] [->relu], NHWC in/out.

    affine_in (per batch,channel) + its ReLU are only applied when in_scale is given
    (used to fuse AdaIN+ReLU into conv2's input path).  emit_stats also returns per-tile
    channel sums / sums-of-squares of the kernel output (for fused AdaIN statistics).
    row_tile=None auto-picks the largest row tile with TH*Wo <= 2048.
    """
    N, H, W, Cin = x_nhwc.shape
    Cout, Cin_w, KH, KW = w_oihw.shape
    assert Cin_w == Cin
    Ho = (H + 2 * padding - KH) // stride + 1
    Wo = (W + 2 * padding - KW) // stride + 1
    out_dtype = out_dtype if out_dtype is not None else compute_dtype

    x = x_nhwc.astype(compute_dtype)
    w_kc = jnp.transpose(w_oihw, (2, 3, 1, 0)).reshape(KH * KW * Cin, Cout).astype(compute_dtype)

    if row_tile is None:
        TH = _pick_row_tile(Ho, Wo)
    else:
        TH = row_tile if (Ho % row_tile == 0) else Ho
    T = Ho // TH
    P = TH * Wo

    # ---- arrange the activation operand ----
    if (KH, KW) == (1, 1):
        # 1x1 conv: handle stride by subsampling in JAX (free-ish), kernel sees a flat (P, C) tile
        assert padding == 0
        flat = True
        x_eff = x[:, ::stride, ::stride, :]
        C_eff = Cin
        x_op = x_eff.reshape(N, T, P, C_eff)
        x_spec = pl.BlockSpec((1, 1, P, C_eff), lambda n, t: (n, t, 0, 0))
        cin_k, kh_k, kw_k = C_eff, 1, 1
    elif stride == 1:
        # main path: pass the padded tile once; taps are sliced in-kernel (no HBM replication)
        flat = False
        halo = KH - 1
        Wp = W + 2 * padding
        xp = jnp.pad(x, ((0, 0), (padding, padding), (padding, padding), (0, 0)),
                     constant_values=pad_value)
        if T == 1:
            x_tiles = xp[:, None]                                  # (N, 1, Ho+halo, Wp, Cin)
        else:
            x_tiles = jnp.stack([xp[:, t * TH: t * TH + TH + halo] for t in range(T)], axis=1)
        x_op = x_tiles
        x_spec = pl.BlockSpec((1, 1, TH + halo, Wp, Cin), lambda n, t: (n, t, 0, 0, 0))
        cin_k, kh_k, kw_k = Cin, KH, KW
    else:
        # TODO(synk): stride>1 with KH>1 uses a JAX-side im2col (9/stride^2 replication), then
        # runs as a 1x1 conv over K*Cin channels inside the kernel.
        flat = True
        xp = jnp.pad(x, ((0, 0), (padding, padding), (padding, padding), (0, 0)),
                     constant_values=pad_value)
        taps = [xp[:, kh:kh + stride * (Ho - 1) + 1:stride,
                   kw:kw + stride * (Wo - 1) + 1:stride, :]
                for kh in range(KH) for kw in range(KW)]
        x_eff = jnp.concatenate(taps, axis=-1)                     # (N, Ho, Wo, K*Cin)
        C_eff = KH * KW * Cin
        x_op = x_eff.reshape(N, T, P, C_eff)
        x_spec = pl.BlockSpec((1, 1, P, C_eff), lambda n, t: (n, t, 0, 0))
        cin_k, kh_k, kw_k = C_eff, 1, 1

    # ---- output affine (folded BN or identity), f32 ----
    if out_scale is None:
        osc = jnp.ones((1, Cout), jnp.float32)
        osh = jnp.zeros((1, Cout), jnp.float32)
    else:
        osc = out_scale.reshape(1, Cout).astype(jnp.float32)
        osh = out_shift.reshape(1, Cout).astype(jnp.float32)

    has_in = in_scale is not None
    has_res = residual is not None

    inputs = [x_op, w_kc, osc, osh]
    in_specs = [x_spec,
                pl.BlockSpec(w_kc.shape, lambda n, t: (0, 0)),
                pl.BlockSpec((1, Cout), lambda n, t: (0, 0)),
                pl.BlockSpec((1, Cout), lambda n, t: (0, 0))]
    if has_in:
        isc = in_scale.reshape(N, 1, Cin).astype(jnp.float32)
        ish = in_shift.reshape(N, 1, Cin).astype(jnp.float32)
        inputs += [isc, ish]
        in_specs += [pl.BlockSpec((1, 1, Cin), lambda n, t: (n, 0, 0))] * 2
    if has_res:
        inputs.append(residual.astype(compute_dtype).reshape(N, T, P, Cout))
        in_specs.append(pl.BlockSpec((1, 1, P, Cout), lambda n, t: (n, t, 0, 0)))

    out_shapes = [jax.ShapeDtypeStruct((N, T, P, Cout), out_dtype)]
    out_specs = [pl.BlockSpec((1, 1, P, Cout), lambda n, t: (n, t, 0, 0))]
    if emit_stats:
        out_shapes.append(jax.ShapeDtypeStruct((N, T, 2, Cout), jnp.float32))
        out_specs.append(pl.BlockSpec((1, 1, 2, Cout), lambda n, t: (n, t, 0, 0)))

    kernel = functools.partial(
        _conv_kernel, KH=kh_k, KW=kw_k, TH=TH, Wo=Wo, Cin=cin_k,
        flat_input=flat, has_in_act=has_in, has_residual=has_res,
        apply_relu=relu, emit_stats=emit_stats)

    results = pl.pallas_call(
        kernel,
        out_shape=tuple(out_shapes) if emit_stats else out_shapes[0],
        grid=(N, T),
        in_specs=in_specs,
        out_specs=tuple(out_specs) if emit_stats else out_specs[0],
        compiler_params=pltpu.CompilerParams(
            dimension_semantics=("parallel", "parallel")),
    )(*inputs)

    if emit_stats:
        out, stats = results
        return out.reshape(N, Ho, Wo, Cout), stats
    return results.reshape(N, Ho, Wo, Cout)


def _fold_bn(bn, eps=_BN_EPS):
    gamma, beta, mean, var = bn
    s = gamma / jnp.sqrt(var + eps)
    return s, beta - mean * s


def pre_block_forward(x_nchw, style_label, b, params, stride=1,
                      compute_dtype=jnp.bfloat16):
    """PreBlock.forward(x, style_label, b) — NCHW in, NCHW out (PyTorch convention).

    style_label: 1-D int array of length (N - b), indexing into the b trailing style images.
    """
    x = jnp.transpose(x_nchw, (0, 2, 3, 1))                        # -> NHWC
    N = x.shape[0]
    planes = params["w1"].shape[0]
    nc = N - b

    # conv1: raw conv output (bf16) + fused per-tile channel moments for AdaIN (f32)
    h1, stats = conv_bn_pallas(x, params["w1"], stride=stride, padding=1,
                               relu=False, emit_stats=True,
                               compute_dtype=compute_dtype, out_dtype=compute_dtype)

    # ---- AdaIN: combine per-tile moments (tiny, f32) -> per-(n,c) mean/std -> affine ----
    M = h1.shape[1] * h1.shape[2]
    ssum = jnp.sum(stats[:, :, 0, :], axis=1)                      # (N, C)
    ssq = jnp.sum(stats[:, :, 1, :], axis=1)                       # (N, C)
    mean = ssum / M
    var = jnp.maximum(ssq - ssum * mean, 0.0) / (M - 1)            # unbiased, like torch.var
    std = jnp.sqrt(var + _ADAIN_EPS)
    s_mean = mean[nc:][style_label]                                # (nc, C)
    s_std = std[nc:][style_label]
    a_scale = s_std / std[:nc]
    a_shift = s_mean - mean[:nc] * a_scale
    in_scale = jnp.concatenate([a_scale, jnp.ones((b, planes), jnp.float32)], axis=0)
    in_shift = jnp.concatenate([a_shift, jnp.zeros((b, planes), jnp.float32)], axis=0)

    # shortcut on the ORIGINAL x
    if "sc_w" in params:
        s_sc, s_sh = _fold_bn(params["sc_bn"])
        short = conv_bn_pallas(x, params["sc_w"], stride=stride, padding=0,
                               out_scale=s_sc, out_shift=s_sh, relu=False,
                               compute_dtype=compute_dtype, out_dtype=compute_dtype)
    else:
        short = x.astype(compute_dtype)

    # conv2 fused with: AdaIN affine + ReLU on its input, folded BN, residual add, final ReLU
    b_sc, b_sh = _fold_bn(params["bn"])
    out = conv_bn_pallas(h1, params["w2"], stride=1, padding=1,
                         in_scale=in_scale, in_shift=in_shift, pad_value=_NEG_PAD,
                         out_scale=b_sc, out_shift=b_sh,
                         residual=short, relu=True,
                         compute_dtype=compute_dtype, out_dtype=jnp.float32)
    return jnp.transpose(out, (0, 3, 1, 2))                        # back to NCHW


# ------------------------- pure-JAX reference for validation -------------------------
def _ref_conv(x, w, stride, padding):
    return jax.lax.conv_general_dilated(
        x, jnp.transpose(w, (2, 3, 1, 0)), (stride, stride),
        [(padding, padding), (padding, padding)],
        dimension_numbers=("NHWC", "HWIO", "NHWC"),
        precision=jax.lax.Precision.HIGHEST)


def pre_block_ref(x_nchw, style_label, b, params, stride=1):
    x = jnp.transpose(x_nchw, (0, 2, 3, 1)).astype(jnp.float32)
    N = x.shape[0]
    nc = N - b
    h = _ref_conv(x, params["w1"], stride, 1)
    mean = jnp.mean(h, axis=(1, 2), keepdims=True)
    std = jnp.sqrt(jnp.var(h, axis=(1, 2), ddof=1, keepdims=True) + _ADAIN_EPS)
    content, style = h[:nc], h[nc:]
    adaptive = (content - mean[:nc]) / std[:nc] * std[nc:][style_label] + mean[nc:][style_label]
    h = jax.nn.relu(jnp.concatenate([adaptive, style], axis=0))
    h = _ref_conv(h, params["w2"], 1, 1)
    g, be, m, v = params["bn"]
    s = g / jnp.sqrt(v + _BN_EPS)
    h = h * s + (be - m * s)
    if "sc_w" in params:
        gs, bs, ms, vs = params["sc_bn"]
        ss = gs / jnp.sqrt(vs + _BN_EPS)
        short = _ref_conv(x, params["sc_w"], stride, 0) * ss + (bs - ms * ss)
    else:
        short = x
    h = jax.nn.relu(h + short)
    return jnp.transpose(h, (0, 3, 1, 2))


# ------------------------------- deterministic params -------------------------------
def init_params(key, in_planes, planes, stride):
    ks = jax.random.split(key, 8)

    def bn_params(k):
        k1, k2, k3, k4 = jax.random.split(k, 4)
        gamma = 1.0 + 0.1 * jax.random.normal(k1, (planes,), jnp.float32)
        beta = 0.1 * jax.random.normal(k2, (planes,), jnp.float32)
        mean = 0.1 * jax.random.normal(k3, (planes,), jnp.float32)
        var = jax.random.uniform(k4, (planes,), jnp.float32, 0.5, 1.5)
        return (gamma, beta, mean, var)

    params = {
        "w1": 0.1 * jax.random.normal(ks[0], (planes, in_planes, 3, 3), jnp.float32),
        "w2": 0.1 * jax.random.normal(ks[1], (planes, planes, 3, 3), jnp.float32),
        "bn": bn_params(ks[2]),
    }
    if stride != 1 or in_planes != planes:
        params["sc_w"] = 0.1 * jax.random.normal(ks[3], (planes, in_planes, 1, 1), jnp.float32)
        params["sc_bn"] = bn_params(ks[4])
    return params


if __name__ == "__main__":
    key = jax.random.PRNGKey(0)
    k_x, k_p, k_p2 = jax.random.split(key, 3)

    # 2 content images + 2 style images; style_label maps each content image to a style image
    n_content, b = 2, 2
    N, in_planes, H, W = n_content + b, 4, 16, 16
    planes, stride = 8, 1          # in_planes != planes -> exercises the 1x1-conv+BN shortcut
    style_label = jnp.array([1, 0], dtype=jnp.int32)

    x = jax.random.normal(k_x, (N, in_planes, H, W), jnp.float32)
    params = init_params(k_p, in_planes, planes, stride)
    ref = pre_block_ref(x, style_label, b, params, stride)

    # f32 data path: tight numerical check
    out32 = jax.block_until_ready(
        pre_block_forward(x, style_label, b, params, stride, compute_dtype=jnp.float32))
    assert out32.shape == ref.shape == (N, planes, H // stride, W // stride), (out32.shape, ref.shape)
    assert bool(jnp.allclose(out32, ref, atol=2e-3, rtol=2e-3)), "f32 Pallas result mismatch"

    # bf16 data path (default): looser check
    outbf = jax.block_until_ready(pre_block_forward(x, style_label, b, params, stride))
    assert bool(jnp.allclose(outbf, ref, atol=5e-2, rtol=5e-2)), "bf16 Pallas result mismatch"

    # stride=2 variant exercises the strided-conv fallback + strided 1x1 projection shortcut
    params2 = init_params(k_p2, in_planes, planes, 2)
    ref2 = pre_block_ref(x, style_label, b, params2, 2)
    out2 = jax.block_until_ready(
        pre_block_forward(x, style_label, b, params2, 2, compute_dtype=jnp.float32))
    assert bool(jnp.allclose(out2, ref2, atol=2e-3, rtol=2e-3)), "stride-2 Pallas result mismatch"

    print("KERNEL_OK")
</pallas_src>

<mosaic_0001>
module attributes {stable_mosaic.version = 11 : i64} {
  func.func @_conv_kernel(%arg0: i32, %arg1: i32, %arg2: memref<1x1x18x18x4xf32, #tpu.memory_space<vmem>>, %arg3: memref<36x8xf32, #tpu.memory_space<vmem>>, %arg4: memref<1x8xf32, #tpu.memory_space<vmem>>, %arg5: memref<1x8xf32, #tpu.memory_space<vmem>>, %arg6: memref<1x1x256x8xf32, #tpu.memory_space<vmem>>, %arg7: memref<1x1x2x8xf32, #tpu.memory_space<vmem>>) attributes {dimension_semantics = [#tpu.dimension_semantics<parallel>, #tpu.dimension_semantics<parallel>], iteration_bounds = array<i64: 4, 1>, scalar_prefetch = 0 : i64, scratch_operands = 0 : i64, tpu.core_type = #tpu.core_type<tc>, window_params = [{transform_indices = @transform_0, window_bounds = array<i64: 1, 1, 18, 18, 4>}, {pipeline_mode = #tpu.pipeline_mode<synchronous>, transform_indices = @transform_1, window_bounds = array<i64: 36, 8>}, {pipeline_mode = #tpu.pipeline_mode<synchronous>, transform_indices = @transform_2, window_bounds = array<i64: 1, 8>}, {pipeline_mode = #tpu.pipeline_mode<synchronous>, transform_indices = @transform_3, window_bounds = array<i64: 1, 8>}, {transform_indices = @transform_4, window_bounds = array<i64: 1, 1, 256, 8>}, {transform_indices = @transform_5, window_bounds = array<i64: 1, 1, 2, 8>}]} {
    %c0 = arith.constant 0 : index
    %c0_0 = arith.constant 0 : index
    %c0_1 = arith.constant 0 : index
    %c0_2 = arith.constant 0 : index
    %c0_3 = arith.constant 0 : index
    %0 = vector.load %arg2[%c0, %c0_0, %c0_1, %c0_2, %c0_3] : memref<1x1x18x18x4xf32, #tpu.memory_space<vmem>>, vector<1x1x18x18x4xf32>
    %1 = vector.shape_cast %0 : vector<1x1x18x18x4xf32> to vector<18x18x4xf32>
    %2 = vector.extract_strided_slice %1 {offsets = [0, 0, 0], sizes = [16, 16, 4], strides = [1, 1, 1]} : vector<18x18x4xf32> to vector<16x16x4xf32>
    %3 = vector.extract_strided_slice %1 {offsets = [0, 1, 0], sizes = [16, 16, 4], strides = [1, 1, 1]} : vector<18x18x4xf32> to vector<16x16x4xf32>
    %4 = vector.extract_strided_slice %1 {offsets = [0, 2, 0], sizes = [16, 16, 4], strides = [1, 1, 1]} : vector<18x18x4xf32> to vector<16x16x4xf32>
    %5 = vector.extract_strided_slice %1 {offsets = [1, 0, 0], sizes = [16, 16, 4], strides = [1, 1, 1]} : vector<18x18x4xf32> to vector<16x16x4xf32>
    %6 = vector.extract_strided_slice %1 {offsets = [1, 1, 0], sizes = [16, 16, 4], strides = [1, 1, 1]} : vector<18x18x4xf32> to vector<16x16x4xf32>
    %7 = vector.extract_strided_slice %1 {offsets = [1, 2, 0], sizes = [16, 16, 4], strides = [1, 1, 1]} : vector<18x18x4xf32> to vector<16x16x4xf32>
    %8 = vector.extract_strided_slice %1 {offsets = [2, 0, 0], sizes = [16, 16, 4], strides = [1, 1, 1]} : vector<18x18x4xf32> to vector<16x16x4xf32>
    %9 = vector.extract_strided_slice %1 {offsets = [2, 1, 0], sizes = [16, 16, 4], strides = [1, 1, 1]} : vector<18x18x4xf32> to vector<16x16x4xf32>
    %10 = vector.extract_strided_slice %1 {offsets = [2, 2, 0], sizes = [16, 16, 4], strides = [1, 1, 1]} : vector<18x18x4xf32> to vector<16x16x4xf32>
    %11 = tpu.concatenate %2, %3, %4, %5, %6, %7, %8, %9, %10 in 2 : vector<16x16x4xf32>, vector<16x16x4xf32>, vector<16x16x4xf32>, vector<16x16x4xf32>, vector<16x16x4xf32>, vector<16x16x4xf32>, vector<16x16x4xf32>, vector<16x16x4xf32>, vector<16x16x4xf32> -> vector<16x16x36xf32>
    %12 = vector.shape_cast %11 : vector<16x16x36xf32> to vector<256x36xf32>
    %c0_4 = arith.constant 0 : index
    %c0_5 = arith.constant 0 : index
    %13 = vector.load %arg3[%c0_4, %c0_5] : memref<36x8xf32, #tpu.memory_space<vmem>>, vector<36x8xf32>
    %cst = arith.constant dense<0.000000e+00> : vector<256x8xf32>
    %14 = tpu.matmul %12, %13, %cst {dimension_numbers = #tpu.dot_dimension_numbers<[1], [0], [0], [1], [0, 0, 1, 1], [], []>} : vector<256x36xf32>, vector<36x8xf32>, vector<256x8xf32> -> vector<256x8xf32>
    %c0_6 = arith.constant 0 : index
    %c0_7 = arith.constant 0 : index
    %15 = vector.load %arg4[%c0_6, %c0_7] : memref<1x8xf32, #tpu.memory_space<vmem>>, vector<1x8xf32>
    %16 = vector.broadcast %15 : vector<1x8xf32> to vector<256x8xf32>
    %17 = arith.mulf %14, %16 : vector<256x8xf32>
    %c0_8 = arith.constant 0 : index
    %c0_9 = arith.constant 0 : index
    %18 = vector.load %arg5[%c0_8, %c0_9] : memref<1x8xf32, #tpu.memory_space<vmem>>, vector<1x8xf32>
    %19 = vector.broadcast %18 : vector<1x8xf32> to vector<256x8xf32>
    %20 = arith.addf %17, %19 : vector<256x8xf32>
    %cst_10 = arith.constant dense<0.000000e+00> : vector<8xf32>
    %21 = vector.multi_reduction <add>, %20, %cst_10 [0] : vector<256x8xf32> to vector<8xf32>
    %22 = vector.shape_cast %21 : vector<8xf32> to vector<1x8xf32>
    %23 = arith.mulf %20, %20 : vector<256x8xf32>
    %cst_11 = arith.constant dense<0.000000e+00> : vector<8xf32>
    %24 = vector.multi_reduction <add>, %23, %cst_11 [0] : vector<256x8xf32> to vector<8xf32>
    %25 = vector.shape_cast %24 : vector<8xf32> to vector<1x8xf32>
    %26 = tpu.concatenate %22, %25 in 0 : vector<1x8xf32>, vector<1x8xf32> -> vector<2x8xf32>
    %c0_12 = arith.constant 0 : index
    %c0_13 = arith.constant 0 : index
    %c0_14 = arith.constant 0 : index
    %c0_15 = arith.constant 0 : index
    %27 = vector.load %arg7[%c0_12, %c0_13, %c0_14, %c0_15] : memref<1x1x2x8xf32, #tpu.memory_space<vmem>>, vector<1x1x2x8xf32>
    %28 = vector.shape_cast %27 : vector<1x1x2x8xf32> to vector<2x8xf32>
    %29 = vector.shape_cast %26 : vector<2x8xf32> to vector<1x1x2x8xf32>
    tpu.vector_store %arg7[%c0_12, %c0_13, %c0_14, %c0_15], %29 {strides = array<i32>} : memref<1x1x2x8xf32, #tpu.memory_space<vmem>>, vector<1x1x2x8xf32>,
    %c0_16 = arith.constant 0 : index
    %c0_17 = arith.constant 0 : index
    %c0_18 = arith.constant 0 : index
    %c0_19 = arith.constant 0 : index
    %30 = vector.load %arg6[%c0_16, %c0_17, %c0_18, %c0_19] : memref<1x1x256x8xf32, #tpu.memory_space<vmem>>, vector<1x1x256x8xf32>
    %31 = vector.shape_cast %30 : vector<1x1x256x8xf32> to vector<256x8xf32>
    %32 = vector.shape_cast %20 : vector<256x8xf32> to vector<1x1x256x8xf32>
    tpu.vector_store %arg6[%c0_16, %c0_17, %c0_18, %c0_19], %32 {strides = array<i32>} : memref<1x1x256x8xf32, #tpu.memory_space<vmem>>, vector<1x1x256x8xf32>,
    return
  }
  func.func @transform_0(%arg0: i32, %arg1: i32) -> (i32, i32, i32, i32, i32) {
    %c0_i32 = arith.constant 0 : i32
    %c0_i32_0 = arith.constant 0 : i32
    %c0_i32_1 = arith.constant 0 : i32
    %c0_i32_2 = arith.constant 0 : i32
    return %arg0, %arg1, %c0_i32, %c0_i32_0, %c0_i32_1 : i32, i32, i32, i32, i32
  }
  func.func @transform_1(%arg0: i32, %arg1: i32) -> (i32, i32) {
    %c0_i32 = arith.constant 0 : i32
    %c0_i32_0 = arith.constant 0 : i32
    %c0_i32_1 = arith.constant 0 : i32
    return %c0_i32, %c0_i32_0 : i32, i32
  }
  func.func @transform_2(%arg0: i32, %arg1: i32) -> (i32, i32) {
    %c0_i32 = arith.constant 0 : i32
    %c0_i32_0 = arith.constant 0 : i32
    %c0_i32_1 = arith.constant 0 : i32
    return %c0_i32, %c0_i32_0 : i32, i32
  }
  func.func @transform_3(%arg0: i32, %arg1: i32) -> (i32, i32) {
    %c0_i32 = arith.constant 0 : i32
    %c0_i32_0 = arith.constant 0 : i32
    %c0_i32_1 = arith.constant 0 : i32
    return %c0_i32, %c0_i32_0 : i32, i32
  }
  func.func @transform_4(%arg0: i32, %arg1: i32) -> (i32, i32, i32, i32) {
    %c0_i32 = arith.constant 0 : i32
    %c0_i32_0 = arith.constant 0 : i32
    %c0_i32_1 = arith.constant 0 : i32
    return %arg0, %arg1, %c0_i32, %c0_i32_0 : i32, i32, i32, i32
  }
  func.func @transform_5(%arg0: i32, %arg1: i32) -> (i32, i32, i32, i32) {
    %c0_i32 = arith.constant 0 : i32
    %c0_i32_0 = arith.constant 0 : i32
    %c0_i32_1 = arith.constant 0 : i32
    return %arg0, %arg1, %c0_i32, %c0_i32_0 : i32, i32, i32, i32
  }
}

</mosaic_0001>

<bundles_post_ra>
// kernel: tpu_custom_call.1
= control target key start
LH: loop header
LB: loop body
LE: loop exit
PB: predicated region body
PF: predicated region fallthrough
CT: control target
= control target key end

     0   :  { %11 = vsyncpa [#allocation3], 0  ;;  %s4620_s0 = inlined_call_operand.vmem [shape: f32[4,1,18,18,4], index: 0, kind: input, shape index: {}]   ;;  %s4621_s1 = inlined_call_operand.vmem [shape: f32[36,8], index: 1, kind: input, shape index: {}]   ;;  %s4622_s2 = inlined_call_operand.vmem [shape: f32[1,8], index: 2, kind: input, shape index: {}]   ;;  %s4623_s3 = inlined_call_operand.vmem [shape: f32[1,8], index: 3, kind: input, shape index: {}]   ;;  %s4624_s4 = inlined_call_operand.vmem [shape: f32[4,1,256,8], index: 4, kind: output, shape index: {0}]   ;;  %s4625_s5 = inlined_call_operand.hbm [shape: f32[4,1,2,8], index: 5, kind: output, shape index: {1}]  }
   0x1   :  { %13 = vsyncpa [#allocation3 + $0x1], 0  ;;  %s2721_s18 = smov 0   ;;  %s2723_s19 = smov 0  }
   0x2   :  { %s2725_s20 = smov 0   ;;  %s2727_s21 = smov 0  }
   0x3   :  { %s2729_s22 = smov 0   ;;  %s2731_s23 = smov 0  }
   0x4 LB: > { %s2356_s24 = sadd.s32 4294967295, %s2680_s23   ;;  %s2357_s25 = sadd.s32 4294967294, %s2680_s23   ;;  %s2680_s23 = sphi %s2731_s23, %s19_s23   ;;  %s2676_s22 = sphi %s2729_s22, %s4874_s22   ;;  %s2672_s21 = sphi %s2727_s21, %s4873_s21   ;;  %s2668_s20 = sphi %s2725_s20, %s4872_s20   ;;  %s2664_s19 = sphi %s2723_s19, %s4871_s19   ;;  %s2660_s18 = sphi %s2721_s18, %s4870_s18  }
   0x5   : > { %s31_s26 = sadd.s32 1, %s2676_s22  ;;  %s159_s27 = sadd.s32 1, %s2668_s20 }
   0x6   : > { %p33_p0 = scmp.ge.s32.totalorder %s31_s26, 4  ;;  %p169_p1 = scmp.ne.s32.totalorder %s2668_s20, %s2664_s19 }
   0x7   : > { %p170_p2 = scmp.eq.s32.totalorder %s2356_s24, 3  ;;  %p175_p3 = scmp.ne.s32.totalorder %s2664_s19, %s2660_s18 }
   0x8   : > { %s4876_s26 = smov (%p33_p0, %s31_s26), 0  ;;  %p176_p5 = scmp.eq.s32.totalorder %s2357_s25, 3 }
   0x9   : > { %p2761_p4 = por %p170_p2, %p169_p1  ;;  %s154_s29 = ssub.s32 %s2676_s22, %s4876_s26 }
   0xa   : > { %p2360_p6 = scmp.ge.s32.totalorder %s2680_s23, 1  ;;  %p157_p7 = scmp.eq.s32.totalorder %s154_s29, 0 }
   0xb   : > { %p2768_p8 = por %p176_p5, %p175_p3  ;;  %p215_p9 = scmp.lt.s32.totalorder %s2680_s23, 5 }
   0xc   : > { %s2774_s6 = scalar_select %p157_p7, %s2668_s20, %s159_s27  }
   0xd   : > { %p216_p10 = pnand %p2360_p6, %p215_p9 }
   0xf   : > { %219 = sbr.rel (%p216_p10) target bundleno = 889 (0x379), region = 36 }
  0x14   : > { %p256_p11 = scmp.lt.s32.totalorder %s2672_s21, 3  ;;  %vm376_vm0 = vcmask 1046528   ;;  %s2682_s12 = smov 4   ;;  %vm553_vm1 = vcmask 1045504   ;;  %vm1698_vm2 = vcmask 1043456   ;;  %vm1332_vm3 = vcmask 31744  }
  0x15   : > { %s2683_s13 = smov 8   ;;  %s2684_s14 = smov 12   ;;  %vm1365_vm4 = vcmask 64512   ;;  %vm1398_vm5 = vcmask 97280   ;;  %vm1431_vm6 = vcmask 130048   ;;  %vm1464_vm7 = vcmask 162816  }
  0x16   : > { %s2778_s7 = scalar_select %p256_p11, %s2672_s21, 3  ;;  %vm1497_vm8 = vcmask 195584   ;;  %vm1530_vm9 = vcmask 228352   ;;  %vm1563_vm10 = vcmask 261120   ;;  %vm1601_vm11 = vcmask 293888  }
  0x17   : > { %s2685_s15 = smov 16   ;;  %s2686_s24 = smov 20   ;;  %vm2175_vm12 = vcmask 1040384   ;;  %vm2177_vm13 = vcmask 58368  }
  0x18   : > { %s2510_s8 = smul.u32 432, %s2778_s7  ;;  %s2687_s9 = smov 24  }
  0x19   : > { %s2688_s17 = smov 28   ;;  %s2689_s25 = smov 32  }
  0x1a   : > { %s2784_s11 = scalar_lea.vmem %s4620_s0, %s2510_s8  ;;  %s2404_s27 = sshll.u32 %s2778_s7, 8 }
  0x1b   : > { %v2787_v0 = vld [vmem:[%s2784_s11 + $0x18] sm:$0xff]  ;;  %v2790_v1 = vld [vmem:[%s2784_s11 + $0x20] sm:$0xff]  ;;  %v2798_v5 = vld [vmem:[%s2784_s11 + $0x8] sm:$0xff] }
  0x1c   : > { %v2793_v2 = vld [vmem:[%s2784_s11] sm:$0xff]  ;;  %v382_v3 = vrot.slane %v2787_v0, 1  ;;  %v383_v4 = vrot.slane %v2790_v1, 1  ;;  %4699 = vst [vmem:[#allocation6_spill] sm:$0xff] %v2798_v5  ;;  %v2802_v7 = vld [vmem:[%s2784_s11 + $0x28] sm:$0x3] }
  0x1d   : > { %4698 = vst [vmem:[#allocation5_spill] sm:$0xff] %v2793_v2  ;;  %v377_v6 = vrot.slane %v2793_v2, 1  ;;  %v378_v8 = vrot.slane %v2798_v5, 1  ;;  %v385_v9 = vrot.slane %v2802_v7, 1  ;;  %v2807_v10 = vld [vmem:[%s2784_s11 + $0x10] sm:$0x3] }
  0x1e   : > { %v2810_v11 = vld [vmem:[%s2784_s11 + $0x38] sm:$0xff]  ;;  %v2813_v12 = vsel %vm376_vm0, %v382_v3, %v383_v4  ;;  %v380_v13 = vrot.slane %v2807_v10, 1  ;;  %v2817_v14 = vld [vmem:[%s2784_s11 + $0x40] sm:$0x3]  ;;  %v2820_v15 = vld [vmem:[%s2784_s11 + $0x30] sm:$0xff] }
  0x1f   : > { %461 = vrot.lane.b32.xlu1 %v2813_v12, %s2682_s12  ;;  %v379_v16 = vsel %vm376_vm0, %v377_v6, %v378_v8  ;;  %v2827_v17 = vsel %vm376_vm0, %v383_v4, %v385_v9  ;;  %v388_v18 = vrot.slane %v2810_v11, 1  ;;  %v390_v19 = vrot.slane %v2817_v14, 1  ;;  %v2834_v22 = vld [vmem:[%s2784_s11 + $0x50] sm:$0xff]  ;;  %v2837_v23 = vld [vmem:[%s2784_s11 + $0x58] sm:$0x3]  ;;  %v2840_v24 = vld [vmem:[%s2784_s11 + $0x48] sm:$0xff] }
  0x20   : > { %457 = vrot.lane.b32.xlu0 %v379_v16, %s2682_s12  ;;  %v381_v20 = vsel %vm376_vm0, %v378_v8, %v380_v13  ;;  %v387_v21 = vrot.slane %v2820_v15, 1  ;;  %v393_v26 = vrot.slane %v2834_v22, 1  ;;  %v395_v27 = vrot.slane %v2837_v23, 1  ;;  %v2855_v30 = vld [vmem:[%s2784_s11 + $0x68] sm:$0xff]  ;;  %v2858_v31 = vld [vmem:[%s2784_s11 + $0x70] sm:$0x3] }
  0x21   : > { %v2846_v25 = vsel %vm376_vm0, %v388_v18, %v390_v19  ;;  %v392_v29 = vrot.slane %v2840_v24, 1  ;;  %v2861_v32 = vld [vmem:[%s2784_s11 + $0x60] sm:$0xff]  ;;  %v398_v34 = vrot.slane %v2855_v30, 1  ;;  %v400_v35 = vrot.slane %v2858_v31, 1  ;;  %v2880_v39 = vld [vmem:[%s2784_s11 + $0x88] sm:$0x3] }
  0x22   : > { %v2851_v28 = vsel %vm376_vm0, %v387_v21, %v388_v18  ;;  %v2868_v33 = vsel %vm376_vm0, %v393_v26, %v395_v27  ;;  %v397_v37 = vrot.slane %v2861_v32, 1  ;;  %v2877_v38 = vld [vmem:[%s2784_s11 + $0x80] sm:$0xff]  ;;  %v2883_v40 = vld [vmem:[%s2784_s11 + $0x78] sm:$0xff]  ;;  %v405_v43 = vrot.slane %v2880_v39, 1  ;;  %v2905_v48 = vld [vmem:[%s2784_s11 + $0x90] sm:$0xff] }
  0x23   : > { %463 = vrot.lane.b32.xlu1 %v2827_v17, %s2682_s12  ;;  %4700 = vst [vmem:[#allocation7_spill] sm:$0xff] %v2868_v33  ;;  %v2873_v36 = vsel %vm376_vm0, %v392_v29, %v393_v26  ;;  %v2890_v41 = vsel %vm376_vm0, %v398_v34, %v400_v35  ;;  %v403_v42 = vrot.slane %v2877_v38, 1  ;;  %v402_v45 = vrot.slane %v2883_v40, 1  ;;  %v2899_v46 = vld [vmem:[%s2784_s11 + $0x98] sm:$0xff]  ;;  %v2902_v47 = vld [vmem:[%s2784_s11 + $0xa0] sm:$0x3] }
  0x24   : > { %459 = vrot.lane.b32.xlu0 %v381_v20, %s2682_s12  ;;  %4701 = vst [vmem:[#allocation8_spill] sm:$0xff] %v2890_v41  ;;  %v2895_v44 = vsel %vm376_vm0, %v397_v37, %v398_v34  ;;  %v408_v50 = vrot.slane %v2899_v46, 1  ;;  %v410_v51 = vrot.slane %v2902_v47, 1  ;;  %v407_v53 = vrot.slane %v2905_v48, 1  ;;  %v2921_v54 = vld [vmem:[%s2784_s11 + $0xb0] sm:$0xff]  ;;  %v2927_v56 = vld [vmem:[%s2784_s11 + $0xa8] sm:$0xff] }
  0x25   : > { %4702 = vst [vmem:[#allocation9_spill] sm:$0xff] %v2895_v44  ;;  %v2912_v49 = vsel %vm376_vm0, %v403_v42, %v405_v43  ;;  %v2917_v52 = vsel %vm376_vm0, %v402_v45, %v403_v42  ;;  %v2924_v55 = vld [vmem:[%s2784_s11 + $0xb8] sm:$0x3]  ;;  %v413_v58 = vrot.slane %v2921_v54, 1  ;;  %v412_v61 = vrot.slane %v2927_v56, 1  ;;  %v2943_v62 = vld [vmem:[%s2784_s11 + $0xc8] sm:$0xff] }
  0x26   : > { %4703 = vst [vmem:[#allocation10_spill] sm:$0xff] %v2912_v49  ;;  %4704 = vst [vmem:[#allocation11_spill] sm:$0xff] %v2917_v52  ;;  %v2934_v57 = vsel %vm376_vm0, %v408_v50, %v410_v51  ;;  %v415_v59 = vrot.slane %v2924_v55, 1  ;;  %v2939_v60 = vsel %vm376_vm0, %v407_v53, %v408_v50  ;;  %v2946_v63 = vld [vmem:[%s2784_s11 + $0xd0] sm:$0x3]  ;;  %v2949_v3 = vld [vmem:[%s2784_s11 + $0xc0] sm:$0xff] }
  0x27   : > { %467 = vrot.lane.b32.xlu1 %v2846_v25, %s2682_s12  ;;  %4705 = vst [vmem:[#allocation12_spill] sm:$0xff] %v2934_v57  ;;  %4706 = vst [vmem:[#allocation13_spill] sm:$0xff] %v2939_v60  ;;  %v418_v6 = vrot.slane %v2943_v62, 1  ;;  %v420_v8 = vrot.slane %v2946_v63, 1  ;;  %v2961_v9 = vsel %vm376_vm0, %v412_v61, %v413_v58  ;;  %v417_v13 = vrot.slane %v2949_v3, 1  ;;  %v2965_v16 = vld [vmem:[%s2784_s11 + $0xe0] sm:$0xff] }
  0x28   : > { %465 = vrot.lane.b32.xlu0 %v2851_v28, %s2682_s12  ;;  %v2956_v4 = vsel %vm376_vm0, %v413_v58, %v415_v59  ;;  %4708 = vst [vmem:[#allocation15_spill] sm:$0xff] %v2961_v9  ;;  %v2968_v18 = vld [vmem:[%s2784_s11 + $0xe8] sm:$0x3]  ;;  %v2971_v19 = vld [vmem:[%s2784_s11 + $0xd8] sm:$0xff]  ;;  %v423_v21 = vrot.slane %v2965_v16, 1  ;;  %v2993_v37 = vld [vmem:[%s2784_s11 + $0xf0] sm:$0xff] }
  0x29   : > { %4707 = vst [vmem:[#allocation14_spill] sm:$0xff] %v2956_v4  ;;  %v2978_v20 = vsel %vm376_vm0, %v418_v6, %v420_v8  ;;  %v425_v26 = vrot.slane %v2968_v18, 1  ;;  %v2983_v27 = vsel %vm376_vm0, %v417_v13, %v418_v6  ;;  %v422_v29 = vrot.slane %v2971_v19, 1  ;;  %v2987_v34 = vld [vmem:[%s2784_s11 + $0xf8] sm:$0xff]  ;;  %v2990_v35 = vld [vmem:[%s2784_s11 + $0x100] sm:$0x3] }
  0x2a   : > { %4709 = vst [vmem:[#allocation16_spill] sm:$0xff] %v2978_v20  ;;  %4710 = vst [vmem:[#allocation17_spill] sm:$0xff] %v2983_v27  ;;  %v428_v43 = vrot.slane %v2987_v34, 1  ;;  %v430_v45 = vrot.slane %v2990_v35, 1  ;;  %v427_v51 = vrot.slane %v2993_v37, 1  ;;  %v3009_v53 = vld [vmem:[%s2784_s11 + $0x110] sm:$0xff] }
  0x2b   : > { %471 = vrot.lane.b32.xlu1 %v2868_v33, %s2682_s12  ;;  %v3000_v42 = vsel %vm376_vm0, %v423_v21, %v425_v26  ;;  %v3005_v50 = vsel %vm376_vm0, %v422_v29, %v423_v21  ;;  %v3012_v58 = vld [vmem:[%s2784_s11 + $0x118] sm:$0x3]  ;;  %v3015_v59 = vld [vmem:[%s2784_s11 + $0x108] sm:$0xff]  ;;  %v433_v6 = vrot.slane %v3009_v53, 1  ;;  %v3034_v29 = vld [vmem:[%s2784_s11 + $0x130] sm:$0x3] }
  0x2c   : > { %469 = vrot.lane.b32.xlu0 %v2873_v36, %s2682_s12  ;;  %4711 = vst [vmem:[#allocation18_spill] sm:$0xff] %v3000_v42  ;;  %4712 = vst [vmem:[#allocation19_spill] sm:$0xff] %v3005_v50  ;;  %v3022_v61 = vsel %vm376_vm0, %v428_v43, %v430_v45  ;;  %v435_v8 = vrot.slane %v3012_v58, 1  ;;  %v3027_v13 = vsel %vm376_vm0, %v427_v51, %v428_v43  ;;  %v432_v21 = vrot.slane %v3015_v59, 1  ;;  %v3031_v26 = vld [vmem:[%s2784_s11 + $0x128] sm:$0xff] }
  0x2d   : > { %4713 = vst [vmem:[#allocation20_spill] sm:$0xff] %v3022_v61  ;;  %4714 = vst [vmem:[#allocation21_spill] sm:$0xff] %v3027_v13  ;;  %v438_v43 = vrot.slane %v3031_v26, 1  ;;  %v440_v51 = vrot.slane %v3034_v29, 1 }
  0x2e   : > { %v3044_v45 = vsel %vm376_vm0, %v433_v6, %v435_v8 }
  0x2f   : > { %475 = vrot.lane.b32.xlu1 %v2890_v41, %s2682_s12  ;;  %4715 = vst [vmem:[#allocation22_spill] sm:$0xff] %v3044_v45  ;;  %v3066_v8 = vsel %vm376_vm0, %v438_v43, %v440_v51  ;;  %v3100_v41 = vld [vmem:[%s2784_s11 + $0x178] sm:$0x3] }
  0x30   : > { %473 = vrot.lane.b32.xlu0 %v2895_v44, %s2682_s12  ;;  %4717 = vst [vmem:[#allocation24_spill] sm:$0xff] %v3066_v8 }
  0x33   : > { %479 = vrot.lane.b32.xlu1 %v2912_v49, %s2682_s12 }
  0x34   : > { %477 = vrot.lane.b32.xlu0 %v2917_v52, %s2682_s12  ;;  %v3097_v52 = vld [vmem:[%s2784_s11 + $0x170] sm:$0xff] }
  0x37   : > { %483 = vrot.lane.b32.xlu1 %v2934_v57, %s2682_s12  ;;  %v3075_v57 = vld [vmem:[%s2784_s11 + $0x158] sm:$0xff] }
  0x38   : > { %481 = vrot.lane.b32.xlu0 %v2939_v60, %s2682_s12 }
  0x3b   : > { %487 = vrot.lane.b32.xlu1 %v2956_v4, %s2682_s12 }
  0x3c   : > { %485 = vrot.lane.b32.xlu0 %v2961_v9, %s2682_s12 }
  0x3f   : > { %491 = vrot.lane.b32.xlu1 %v2978_v20, %s2682_s12 }
  0x40   : > { %489 = vrot.lane.b32.xlu0 %v2983_v27, %s2682_s12  ;;  %v3053_v27 = vld [vmem:[%s2784_s11 + $0x140] sm:$0xff] }
  0x43   : > { %495 = vrot.lane.b32.xlu1 %v3000_v42, %s2682_s12  ;;  %v3037_v42 = vld [vmem:[%s2784_s11 + $0x120] sm:$0xff] }
  0x44   : > { %493 = vrot.lane.b32.xlu0 %v3005_v50, %s2682_s12  ;;  %v3049_v50 = vsel %vm376_vm0, %v432_v21, %v433_v6  ;;  %v437_v20 = vrot.slane %v3037_v42, 1  ;;  %v443_v6 = vrot.slane %v3053_v27, 1 }
  0x45   : > { %4716 = vst [vmem:[#allocation23_spill] sm:$0xff] %v3049_v50 }
  0x46   : > { %v3071_v4 = vsel %vm376_vm0, %v437_v20, %v438_v43  ;;  %v448_v20 = vrot.slane %v3075_v57, 1 }
  0x47   : > { %499 = vrot.lane.b32.xlu1 %v3022_v61, %s2682_s12  ;;  %v3056_v61 = vld [vmem:[%s2784_s11 + $0x148] sm:$0x3]  ;;  %4718 = vst [vmem:[#allocation25_spill] sm:$0xff] %v3071_v4 }
  0x48   : > { %497 = vrot.lane.b32.xlu0 %v3027_v13, %s2682_s12  ;;  %v3059_v13 = vld [vmem:[%s2784_s11 + $0x138] sm:$0xff]  ;;  %v445_v21 = vrot.slane %v3056_v61, 1 }
  0x49   : > { %v442_v9 = vrot.slane %v3059_v13, 1 }
  0x4a   : > { %v3088_v51 = vsel %vm376_vm0, %v443_v6, %v445_v21 }
  0x4b   : > { %503 = vrot.lane.b32.xlu1 %v3044_v45, %s2682_s12  ;;  %v3078_v45 = vld [vmem:[%s2784_s11 + $0x160] sm:$0x3]  ;;  %4719 = vst [vmem:[#allocation26_spill] sm:$0xff] %v3088_v51  ;;  %v3093_v60 = vsel %vm376_vm0, %v442_v9, %v443_v6  ;;  %v453_v9 = vrot.slane %v3097_v52, 1  ;;  %v455_v6 = vrot.slane %v3100_v41, 1 }
  0x4c   : > { %501 = vrot.lane.b32.xlu0 %v3049_v50, %s2682_s12  ;;  %v3081_v50 = vld [vmem:[%s2784_s11 + $0x150] sm:$0xff]  ;;  %v450_v43 = vrot.slane %v3078_v45, 1  ;;  %4720 = vst [vmem:[#allocation27_spill] sm:$0xff] %v3093_v60 }
  0x4d   : > { %v447_v49 = vrot.slane %v3081_v50, 1 }
  0x4e   : > { %v3110_v21 = vsel %vm376_vm0, %v448_v20, %v450_v43  ;;  %v555_v43 = vrot.slane %v2798_v5, 2  ;;  %v592_v5 = vrot.slane %v2924_v55, 2 }
  0x4f   : > { %507 = vrot.lane.b32.xlu1 %v3066_v8, %s2682_s12  ;;  %v3103_v8 = vld [vmem:[%s2784_s11 + $0x168] sm:$0xff]  ;;  %4721 = vst [vmem:[#allocation28_spill] sm:$0xff] %v3110_v21 }
  0x50   : > { %505 = vrot.lane.b32.xlu0 %v3071_v4, %s2682_s12  ;;  %v3115_v4 = vsel %vm376_vm0, %v447_v49, %v448_v20  ;;  %v452_v44 = vrot.slane %v3103_v8, 1  ;;  %v554_v49 = vrot.slane %v2793_v2, 2  ;;  %v597_v2 = vrot.slane %v2946_v63, 2 }
  0x51   : > { %4722 = vst [vmem:[#allocation29_spill] sm:$0xff] %v3115_v4 }
  0x52   : > { %v3128_v33 = vsel %vm376_vm0, %v452_v44, %v453_v9  ;;  %v559_v44 = vrot.slane %v2787_v0, 2 }
  0x53   : > { %511 = vrot.lane.b32.xlu1 %v3088_v51, %s2682_s12  ;;  %v3123_v51 = vsel %vm376_vm0, %v453_v9, %v455_v6  ;;  %4724 = vst [vmem:[#allocation31_spill] sm:$0xff] %v3128_v33  ;;  %v560_v6 = vrot.slane %v2790_v1, 2 }
  0x54   : > { %509 = vrot.lane.b32.xlu0 %v3093_v60, %s2682_s12  ;;  %4723 = vst [vmem:[#allocation30_spill] sm:$0xff] %v3123_v51  ;;  %v557_v60 = vrot.slane %v2807_v10, 2  ;;  %v556_v10 = vsel %vm553_vm1, %v554_v49, %v555_v43  ;;  %v572_v49 = vrot.slane %v2837_v23, 2 }
  0x56   : > { %v558_v20 = vsel %vm553_vm1, %v555_v43, %v557_v60  ;;  %v567_v60 = vrot.slane %v2817_v14, 2 }
  0x57   : > { %515 = vrot.lane.b32.xlu1 %v3110_v21, %s2682_s12  ;;  %v562_v21 = vrot.slane %v2802_v7, 2  ;;  %v564_v7 = vrot.slane %v2820_v15, 2 }
  0x58   : > { %513 = vrot.lane.b32.xlu0 %v3115_v4, %s2682_s12  ;;  %v587_v4 = vrot.slane %v2902_v47, 2 }
  0x59   : > { %v3143_v9 = vsel %vm553_vm1, %v560_v6, %v562_v21  ;;  %v570_v21 = vrot.slane %v2834_v22, 2 }
  0x5b   : > { %519 = vrot.lane.b32.xlu1 %v3123_v51, %s2682_s12  ;;  %v565_v51 = vrot.slane %v2810_v11, 2 }
  0x5c   : > { %517 = vrot.lane.b32.xlu0 %v3128_v33, %s2682_s12  ;;  %v3148_v33 = vsel %vm553_vm1, %v559_v44, %v560_v6  ;;  %v3169_v6 = vsel %vm553_vm1, %v570_v21, %v572_v49  ;;  %v577_v44 = vrot.slane %v2858_v31, 2  ;;  %v582_v49 = vrot.slane %v2880_v39, 2  ;;  %s2401_s12 = sshll.u32 %s2672_s21, 5  ;;  %s2690_s21 = smov [#allocation2]  }
  0x5d   : > { %v3156_v43 = vsel %vm553_vm1, %v565_v51, %v567_v60  ;;  %v3161_v14 = vsel %vm553_vm1, %v564_v7, %v565_v51  ;;  %v574_v51 = vrot.slane %v2861_v32, 2  ;;  %v580_v7 = vrot.slane %v2877_v38, 2 }
  0x5f   : > { %636 = vrot.lane.b32.xlu1 %v558_v20, %s2683_s13  ;;  %v569_v20 = vrot.slane %v2840_v24, 2 }
  0x60   : > { %634 = vrot.lane.b32.xlu0 %v556_v10, %s2683_s13  ;;  %v575_v10 = vrot.slane %v2855_v30, 2 }
  0x61   : > { %v3174_v23 = vsel %vm553_vm1, %v569_v20, %v570_v21  ;;  %v579_v21 = vrot.slane %v2883_v40, 2  ;;  %v3195_v20 = vsel %vm553_vm1, %v580_v7, %v582_v49  ;;  %v590_v49 = vrot.slane %v2921_v54, 2 }
  0x62   : > { %v3182_v60 = vsel %vm553_vm1, %v575_v10, %v577_v44  ;;  %v3187_v31 = vsel %vm553_vm1, %v574_v51, %v575_v10  ;;  %v585_v44 = vrot.slane %v2899_v46, 2  ;;  %v584_v10 = vrot.slane %v2905_v48, 2 }
  0x63   : > { %640 = vrot.lane.b32.xlu1 %v3143_v9, %s2683_s13  ;;  %v3200_v39 = vsel %vm553_vm1, %v579_v21, %v580_v7  ;;  %v589_v7 = vrot.slane %v2927_v56, 2  ;;  %v3221_v21 = vsel %vm553_vm1, %v590_v49, %v592_v5  ;;  %v600_v5 = vrot.slane %v2965_v16, 2 }
  0x64   : > { %638 = vrot.lane.b32.xlu0 %v3148_v33, %s2683_s13  ;;  %v3208_v51 = vsel %vm553_vm1, %v585_v44, %v587_v4  ;;  %v3213_v47 = vsel %vm553_vm1, %v584_v10, %v585_v44  ;;  %4726 = vst [vmem:[#allocation33_spill] sm:$0xff] %v3221_v21  ;;  %v595_v4 = vrot.slane %v2943_v62, 2  ;;  %v594_v44 = vrot.slane %v2949_v3, 2 }
  0x65   : > { %4725 = vst [vmem:[#allocation32_spill] sm:$0xff] %v3208_v51  ;;  %v3226_v55 = vsel %vm553_vm1, %v589_v7, %v590_v49  ;;  %v599_v49 = vrot.slane %v2971_v19, 2 }
  0x66   : > { %v3234_v10 = vsel %vm553_vm1, %v595_v4, %v597_v2  ;;  %v3239_v63 = vsel %vm553_vm1, %v594_v44, %v595_v4  ;;  %v605_v2 = vrot.slane %v2987_v34, 2  ;;  %v604_v4 = vrot.slane %v2993_v37, 2 }
  0x67   : > { %644 = vrot.lane.b32.xlu1 %v3156_v43, %s2683_s13  ;;  %4727 = vst [vmem:[#allocation34_spill] sm:$0xff] %v3234_v10 }
  0x68   : > { %642 = vrot.lane.b32.xlu0 %v3161_v14, %s2683_s13 }
  0x6b   : > { %648 = vrot.lane.b32.xlu1 %v3169_v6, %s2683_s13 }
  0x6c   : > { %646 = vrot.lane.b32.xlu0 %v3174_v23, %s2683_s13 }
  0x6f   : > { %652 = vrot.lane.b32.xlu1 %v3182_v60, %s2683_s13 }
  0x70   : > { %650 = vrot.lane.b32.xlu0 %v3187_v31, %s2683_s13 }
  0x73   : > { %656 = vrot.lane.b32.xlu1 %v3195_v20, %s2683_s13 }
  0x74   : > { %654 = vrot.lane.b32.xlu0 %v3200_v39, %s2683_s13 }
  0x77   : > { %660 = vrot.lane.b32.xlu1 %v3208_v51, %s2683_s13  ;;  %v602_v51 = vrot.slane %v2968_v18, 2  ;;  %v3252_v18 = vsel %vm553_vm1, %v599_v49, %v600_v5 }
  0x78   : > { %658 = vrot.lane.b32.xlu0 %v3213_v47, %s2683_s13 }
  0x79   : > { %v3247_v7 = vsel %vm553_vm1, %v600_v5, %v602_v51  ;;  %v610_v51 = vrot.slane %v3009_v53, 2  ;;  %v609_v5 = vrot.slane %v3015_v59, 2  ;;  %v617_v53 = vrot.slane %v3034_v29, 2 }
  0x7b   : > { %664 = vrot.lane.b32.xlu1 %v3221_v21, %s2683_s13  ;;  %v607_v21 = vrot.slane %v2990_v35, 2  ;;  %v3265_v35 = vsel %vm553_vm1, %v604_v4, %v605_v2 }
  0x7c   : > { %662 = vrot.lane.b32.xlu0 %v3226_v55, %s2683_s13 }
  0x7d   : > { %v3260_v44 = vsel %vm553_vm1, %v605_v2, %v607_v21  ;;  %v615_v21 = vrot.slane %v3031_v26, 2  ;;  %v614_v2 = vrot.slane %v3037_v42, 2  ;;  %v622_v26 = vrot.slane %v3056_v61, 2 }
  0x7f   : > { %668 = vrot.lane.b32.xlu1 %v3234_v10, %s2683_s13  ;;  %v612_v10 = vrot.slane %v3012_v58, 2  ;;  %v3278_v58 = vsel %vm553_vm1, %v609_v5, %v610_v51  ;;  %v3286_v4 = vsel %vm553_vm1, %v615_v21, %v617_v53  ;;  %v3291_v29 = vsel %vm553_vm1, %v614_v2, %v615_v21 }
  0x80   : > { %666 = vrot.lane.b32.xlu0 %v3239_v63, %s2683_s13  ;;  %v625_v5 = vrot.slane %v3075_v57, 2  ;;  %v630_v57 = vrot.slane %v3097_v52, 2 }
  0x81   : > { %v3273_v49 = vsel %vm553_vm1, %v610_v51, %v612_v10  ;;  %v620_v10 = vrot.slane %v3053_v27, 2  ;;  %v619_v51 = vrot.slane %v3059_v13, 2  ;;  %v627_v27 = vrot.slane %v3078_v45, 2 }
  0x82   : > { %v624_v13 = vrot.slane %v3081_v50, 2  ;;  %v632_v45 = vrot.slane %v3100_v41, 2  ;;  %v629_v50 = vrot.slane %v3103_v8, 2 }
  0x83   : > { %672 = vrot.lane.b32.xlu1 %v3247_v7, %s2683_s13  ;;  %v3299_v42 = vsel %vm553_vm1, %v620_v10, %v622_v26  ;;  %v3306_v61 = vsel %vm553_vm1, %v619_v51, %v620_v10  ;;  %v3316_v2 = vsel %vm553_vm1, %v625_v5, %v627_v27 }
  0x84   : > { %670 = vrot.lane.b32.xlu0 %v3252_v18, %s2683_s13  ;;  %4728 = vst [vmem:[#allocation35_spill] sm:$0xff] %v3299_v42  ;;  %4729 = vst [vmem:[#allocation36_spill] sm:$0xff] %v3306_v61  ;;  %v3323_v10 = vsel %vm553_vm1, %v624_v13, %v625_v5  ;;  %v3333_v27 = vsel %vm553_vm1, %v630_v57, %v632_v45  ;;  %v3338_v41 = vsel %vm553_vm1, %v629_v50, %v630_v57 }
  0x85   : > { %4730 = vst [vmem:[#allocation37_spill] sm:$0xff] %v3316_v2  ;;  %4731 = vst [vmem:[#allocation38_spill] sm:$0xff] %v3323_v10 }
  0x86   : > { %4732 = vst [vmem:[#allocation39_spill] sm:$0xff] %v3333_v27  ;;  %4733 = vst [vmem:[#allocation40_spill] sm:$0xff] %v3338_v41 }
  0x87   : > { %676 = vrot.lane.b32.xlu1 %v3260_v44, %s2683_s13 }
  0x88   : > { %674 = vrot.lane.b32.xlu0 %v3265_v35, %s2683_s13 }
  0x8b   : > { %680 = vrot.lane.b32.xlu1 %v3273_v49, %s2683_s13 }
  0x8c   : > { %678 = vrot.lane.b32.xlu0 %v3278_v58, %s2683_s13 }
  0x8f   : > { %684 = vrot.lane.b32.xlu1 %v3286_v4, %s2683_s13 }
  0x90   : > { %682 = vrot.lane.b32.xlu0 %v3291_v29, %s2683_s13 }
  0x91   : > { %v3303_v53 = vpop.permute.xlu1 %461 }
  0x92   : > { %v3309_v21 = vpop.permute.xlu0 %457 }
  0x93   : > { %688 = vrot.lane.b32.xlu1 %v3299_v42, %s2683_s13 }
  0x94   : > { %686 = vrot.lane.b32.xlu0 %v3306_v61, %s2683_s13 }
  0x95   : > { %v3320_v26 = vpop.permute.xlu1 %463 }
  0x96   : > { %v3326_v51 = vpop.permute.xlu0 %459 }
  0x97   : > { %692 = vrot.lane.b32.xlu1 %v3316_v2, %s2683_s13 }
  0x98   : > { %690 = vrot.lane.b32.xlu0 %v3323_v10, %s2683_s13 }
  0x99   : > { %v3335_v52 = vpop.permute.xlu1 %467 }
  0x9a   : > { %v3340_v5 = vpop.permute.xlu0 %465 }
  0x9b   : > { %696 = vrot.lane.b32.xlu1 %v3333_v27, %s2683_s13 }
  0x9c   : > { %694 = vrot.lane.b32.xlu0 %v3338_v41, %s2683_s13 }
  0x9d   : > { %v3346_v8 = vpop.permute.xlu1 %471 }
  0x9e   : > { %v3348_v13 = vpop.permute.xlu0 %469 }
  0x9f   : > { %734 = vrot.lane.b32.xlu1 %v2790_v1, %s2684_s14 }
  0xa0   : > { %732 = vrot.lane.b32.xlu0 %v2787_v0, %s2684_s14 }
  0xa1   : > { %v3354_v57 = vpop.permute.xlu1 %475 }
  0xa2   : > { %v3356_v45 = vpop.permute.xlu0 %473 }
  0xa3   : > { %738 = vrot.lane.b32.xlu1 %v2810_v11, %s2684_s14 }
  0xa4   : > { %736 = vrot.lane.b32.xlu0 %v2820_v15, %s2684_s14 }
  0xa5   : > { %v3362_v50 = vpop.permute.xlu1 %479 }
  0xa6   : > { %v3364_v27 = vpop.permute.xlu0 %477 }
  0xa7   : > { %742 = vrot.lane.b32.xlu1 %v2834_v22, %s2684_s14 }
  0xa8   : > { %740 = vrot.lane.b32.xlu0 %v2840_v24, %s2684_s14 }
  0xa9   : > { %v3370_v0 = vpop.permute.xlu1 %483 }
  0xaa   : > { %4734 = vst [vmem:[#allocation41_spill] sm:$0xff] %v3370_v0  ;;  %v3372_v1 = vpop.permute.xlu0 %481 }
  0xab   : > { %4735 = vst [vmem:[#allocation42_spill] sm:$0xff] %v3372_v1  ;;  %746 = vrot.lane.b32.xlu1 %v2855_v30, %s2684_s14 }
  0xac   : > { %744 = vrot.lane.b32.xlu0 %v2861_v32, %s2684_s14 }
  0xad   : > { %v3378_v41 = vpop.permute.xlu1 %487 }
  0xae   : > { %4736 = vst [vmem:[#allocation43_spill] sm:$0xff] %v3378_v41  ;;  %v3380_v2 = vpop.permute.xlu0 %485 }
  0xaf   : > { %4737 = vst [vmem:[#allocation44_spill] sm:$0xff] %v3380_v2  ;;  %750 = vrot.lane.b32.xlu1 %v2877_v38, %s2684_s14 }
  0xb0   : > { %748 = vrot.lane.b32.xlu0 %v2883_v40, %s2684_s14 }
  0xb1   : > { %v3386_v10 = vpop.permute.xlu1 %491 }
  0xb2   : > { %4738 = vst [vmem:[#allocation45_spill] sm:$0xff] %v3386_v10  ;;  %v3388_v42 = vpop.permute.xlu0 %489 }
  0xb3   : > { %4739 = vst [vmem:[#allocation46_spill] sm:$0xff] %v3388_v42  ;;  %754 = vrot.lane.b32.xlu1 %v2899_v46, %s2684_s14 }
  0xb4   : > { %752 = vrot.lane.b32.xlu0 %v2905_v48, %s2684_s14 }
  0xb5   : > { %v3394_v0 = vpop.permute.xlu1 %495 }
  0xb6   : > { %4740 = vst [vmem:[#allocation47_spill] sm:$0xff] %v3394_v0  ;;  %v3396_v41 = vpop.permute.xlu0 %493 }
  0xb7   : > { %4741 = vst [vmem:[#allocation48_spill] sm:$0xff] %v3396_v41  ;;  %758 = vrot.lane.b32.xlu1 %v2921_v54, %s2684_s14 }
  0xb8   : > { %756 = vrot.lane.b32.xlu0 %v2927_v56, %s2684_s14 }
  0xb9   : > { %v3402_v2 = vpop.permute.xlu1 %499 }
  0xba   : > { %4742 = vst [vmem:[#allocation49_spill] sm:$0xff] %v3402_v2  ;;  %v3404_v10 = vpop.permute.xlu0 %497 }
  0xbb   : > { %4743 = vst [vmem:[#allocation50_spill] sm:$0xff] %v3404_v10  ;;  %762 = vrot.lane.b32.xlu1 %v2943_v62, %s2684_s14 }
  0xbc   : > { %760 = vrot.lane.b32.xlu0 %v2949_v3, %s2684_s14 }
  0xbd   : > { %v3410_v42 = vpop.permute.xlu1 %503 }
  0xbe   : > { %4744 = vst [vmem:[#allocation51_spill] sm:$0xff] %v3410_v42  ;;  %v3412_v0 = vpop.permute.xlu0 %501 }
  0xbf   : > { %4745 = vst [vmem:[#allocation52_spill] sm:$0xff] %v3412_v0  ;;  %766 = vrot.lane.b32.xlu1 %v2965_v16, %s2684_s14 }
  0xc0   : > { %764 = vrot.lane.b32.xlu0 %v2971_v19, %s2684_s14 }
  0xc1   : > { %v3418_v41 = vpop.permute.xlu1 %507 }
  0xc2   : > { %4746 = vst [vmem:[#allocation53_spill] sm:$0xff] %v3418_v41  ;;  %v3420_v2 = vpop.permute.xlu0 %505  ;;  %v1600_v41 = vld [vmem:[%s4621_s1 + $0x20] sm:$0xf] }
  0xc3   : > { %4747 = vst [vmem:[#allocation54_spill] sm:$0xff] %v3420_v2  ;;  %770 = vrot.lane.b32.xlu1 %v2987_v34, %s2684_s14  ;;  %2442 = vmatprep.subr.msk.mxu0 %vm1698_vm2, %v1600_v41 }
  0xc4   : > { %768 = vrot.lane.b32.xlu0 %v2993_v37, %s2684_s14  ;;  %2500 = vmatprep.subr.msk.mxu1 %vm1698_vm2, %v1600_v41 }
  0xc5   : > { %v3426_v10 = vpop.permute.xlu1 %511  ;;  %2443 = vmatpush3.msk.msra.mxu0 %vm1698_vm2, %v1600_v41  ;;  %2505 = vmatpush3.msk.msra.mxu1 %vm1698_vm2, %v1600_v41 }
  0xc6   : > { %4748 = vst [vmem:[#allocation55_spill] sm:$0xff] %v3426_v10  ;;  %v3428_v42 = vpop.permute.xlu0 %509 }
  0xc7   : > { %4749 = vst [vmem:[#allocation56_spill] sm:$0xff] %v3428_v42  ;;  %836 = vrot.lane.b32.xlu1 %v2827_v17, %s2685_s15  ;;  %v1598_v17 = vld [vmem:[%s4621_s1 + $0x10] sm:$0xff] }
  0xc8   : > { %834 = vrot.lane.b32.xlu0 %v2813_v12, %s2685_s15  ;;  %v1599_v12 = vld [vmem:[%s4621_s1 + $0x18] sm:$0xff] }
  0xc9   : > { %v3437_v2 = vpop.permute.xlu1 %515  ;;  %2444 = vmatprep.subr.mxu0 %v1599_v12  ;;  %2501 = vmatprep.subr.mxu1 %v1599_v12 }
  0xca   : > { %4750 = vst [vmem:[#allocation57_spill] sm:$0xff] %v3437_v2  ;;  %v3439_v0 = vpop.permute.xlu0 %513  ;;  %2445 = vmatpush3.msra.mxu0 %v1599_v12  ;;  %2506 = vmatpush3.msra.mxu1 %v1599_v12 }
  0xcb   : > { %4751 = vst [vmem:[#allocation58_spill] sm:$0xff] %v3439_v0  ;;  %937 = vrot.lane.b32.xlu1 %v3143_v9, %s2686_s24  ;;  %2446 = vmatprep.subr.mxu0 %v1598_v17  ;;  %v1596_v9 = vld [vmem:[%s4621_s1] sm:$0xff] }
  0xcc   : > { %935 = vrot.lane.b32.xlu0 %v3148_v33, %s2686_s24  ;;  %2447 = vmatpush3.msra.mxu0 %v1598_v17  ;;  %v1597_v33 = vld [vmem:[%s4621_s1 + $0x8] sm:$0xff] }
  0xcd   : > { %v3451_v2 = vpop.permute.xlu1 %519  ;;  %2448 = vmatprep.subr.mxu0 %v1597_v33  ;;  %2502 = vmatprep.subr.mxu1 %v1598_v17 }
  0xce   : > { %4752 = vst [vmem:[#allocation59_spill] sm:$0xff] %v3451_v2  ;;  %v3453_v41 = vpop.permute.xlu0 %517  ;;  %2449 = vmatpush3.msra.mxu0 %v1597_v33  ;;  %2507 = vmatpush3.msra.mxu1 %v1598_v17 }
  0xcf   : > { %4753 = vst [vmem:[#allocation60_spill] sm:$0xff] %v3453_v41  ;;  %1035 = vrot.lane.b32.xlu1 %v2810_v11, %s2687_s9  ;;  %2450 = vmatprep.subr.mxu0 %v1596_v9 }
  0xd0   : > { %1033 = vrot.lane.b32.xlu0 %v2820_v15, %s2687_s9  ;;  %2451 = vmatpush3.msra.mxu0 %v1596_v9 }
  0xd1   : > { %v3465_v41 = vpop.permute.xlu1 %636  ;;  %2503 = vmatprep.subr.mxu1 %v1597_v33 }
  0xd2   : > { %v3467_v12 = vpop.permute.xlu0 %634  ;;  %2508 = vmatpush3.msra.mxu1 %v1597_v33 }
  0xd3   : > { %838 = vrot.lane.b32.xlu1 %v2851_v28, %s2685_s15  ;;  %2504 = vmatprep.subr.mxu1 %v1596_v9 }
  0xd4   : > { %1135 = vrot.lane.b32.xlu0 %v2851_v28, %s2688_s17  ;;  %2509 = vmatpush3.msra.mxu1 %v1596_v9 }
  0xd5   : > { %v3473_v11 = vpop.permute.xlu1 %640 }
  0xd6   : > { %v3475_v15 = vpop.permute.xlu0 %638 }
  0xd7   : > { %1236 = vrot.lane.b32.xlu1 %v3161_v14, %s2689_s25 }
  0xd8   : > { %1137 = vrot.lane.b32.xlu0 %v2846_v25, %s2688_s17 }
  0xd9   : > { %v3481_v17 = vpop.permute.xlu1 %644 }
  0xda   : > { %v3483_v2 = vpop.permute.xlu0 %642 }
  0xdb   : > { %939 = vrot.lane.b32.xlu1 %v3161_v14, %s2686_s24 }
  0xdc   : > { %840 = vrot.lane.b32.xlu0 %v2846_v25, %s2685_s15 }
  0xdd   : > { %v3489_v28 = vpop.permute.xlu1 %648 }
  0xde   : > { %v3491_v33 = vpop.permute.xlu0 %646 }
  0xdf   : > { %941 = vrot.lane.b32.xlu1 %v3156_v43, %s2686_s24 }
  0xe0   : > { %1238 = vrot.lane.b32.xlu0 %v3156_v43, %s2689_s25 }
  0xe1   : > { %v3497_v9 = vpop.permute.xlu1 %652 }
  0xe2   : > { %v3499_v0 = vpop.permute.xlu0 %650 }
  0xe3   : > { %1039 = vrot.lane.b32.xlu1 %v2834_v22, %s2687_s9  ;;  %v4757_v22 = vld [vmem:[#allocation7_spill] sm:$0xff] }
  0xe4   : > { %1037 = vrot.lane.b32.xlu0 %v2840_v24, %s2687_s9 }
  0xe5   : > { %v3505_v25 = vpop.permute.xlu1 %656 }
  0xe6   : > { %4754 = vst [vmem:[#allocation61_spill] sm:$0xff] %v3505_v25  ;;  %v3507_v14 = vpop.permute.xlu0 %654 }
  0xe7   : > { %842 = vrot.lane.b32.xlu1 %v2873_v36, %s2685_s15 }
  0xe8   : > { %1139 = vrot.lane.b32.xlu0 %v2873_v36, %s2688_s17 }
  0xe9   : > { %v3513_v43 = vpop.permute.xlu1 %660 }
  0xea   : > { %4755 = vst [vmem:[#allocation62_spill] sm:$0xff] %v3513_v43  ;;  %v3515_v10 = vpop.permute.xlu0 %658 }
  0xeb   : > { %4756 = vst [vmem:[#allocation63_spill] sm:$0xff] %v3515_v10  ;;  %1240 = vrot.lane.b32.xlu1 %v3174_v23, %s2689_s25 }
  0xec   : > { %1141 = vrot.lane.b32.xlu0 %v4757_v22, %s2688_s17 }
  0xed   : > { %v3521_v24 = vpop.permute.xlu1 %664 }
  0xee   : > { %4758 = vst [vmem:[#allocation7_spill] sm:$0xff] %v3521_v24  ;;  %v3523_v42 = vpop.permute.xlu0 %662 }
  0xef   : > { %4759 = vst [vmem:[#allocation64_spill] sm:$0xff] %v3523_v42  ;;  %943 = vrot.lane.b32.xlu1 %v3174_v23, %s2686_s24  ;;  %v4787_v42 = vld [vmem:[#allocation32_spill] sm:$0xff] }
  0xf0   : > { %844 = vrot.lane.b32.xlu0 %v4757_v22, %s2685_s15 }
  0xf1   : > { %v3529_v36 = vpop.permute.xlu1 %668 }
  0xf2   : > { %4760 = vst [vmem:[#allocation65_spill] sm:$0xff] %v3529_v36  ;;  %v3531_v43 = vpop.permute.xlu0 %666  ;;  %v4766_v36 = vld [vmem:[#allocation9_spill] sm:$0xff] }
  0xf3   : > { %4761 = vst [vmem:[#allocation66_spill] sm:$0xff] %v3531_v43  ;;  %945 = vrot.lane.b32.xlu1 %v3169_v6, %s2686_s24 }
  0xf4   : > { %1242 = vrot.lane.b32.xlu0 %v3169_v6, %s2689_s25 }
  0xf5   : > { %v3537_v61 = vpop.permute.xlu1 %672 }
  0xf6   : > { %4762 = vst [vmem:[#allocation67_spill] sm:$0xff] %v3537_v61  ;;  %v3539_v24 = vpop.permute.xlu0 %670 }
  0xf7   : > { %4763 = vst [vmem:[#allocation68_spill] sm:$0xff] %v3539_v24  ;;  %1043 = vrot.lane.b32.xlu1 %v2855_v30, %s2687_s9  ;;  %v4769_v30 = vld [vmem:[#allocation8_spill] sm:$0xff] }
  0xf8   : > { %1041 = vrot.lane.b32.xlu0 %v2861_v32, %s2687_s9 }
  0xf9   : > { %v3545_v23 = vpop.permute.xlu1 %676 }
  0xfa   : > { %4764 = vst [vmem:[#allocation69_spill] sm:$0xff] %v3545_v23  ;;  %v3547_v22 = vpop.permute.xlu0 %674 }
  0xfb   : > { %4765 = vst [vmem:[#allocation70_spill] sm:$0xff] %v3547_v22  ;;  %846 = vrot.lane.b32.xlu1 %v4766_v36, %s2685_s15 }
  0xfc   : > { %1143 = vrot.lane.b32.xlu0 %v4766_v36, %s2688_s17 }
  0xfd   : > { %v3553_v6 = vpop.permute.xlu1 %680 }
  0xfe   : > { %4767 = vst [vmem:[#allocation9_spill] sm:$0xff] %v3553_v6  ;;  %v3555_v61 = vpop.permute.xlu0 %678 }
  0xff   : > { %4768 = vst [vmem:[#allocation71_spill] sm:$0xff] %v3555_v61  ;;  %1244 = vrot.lane.b32.xlu1 %v3187_v31, %s2689_s25 }
 0x100   : > { %1145 = vrot.lane.b32.xlu0 %v4769_v30, %s2688_s17 }
 0x101   : > { %v3561_v32 = vpop.permute.xlu1 %684 }
 0x102   : > { %4770 = vst [vmem:[#allocation8_spill] sm:$0xff] %v3561_v32  ;;  %v3563_v23 = vpop.permute.xlu0 %682 }
 0x103   : > { %4771 = vst [vmem:[#allocation72_spill] sm:$0xff] %v3563_v23  ;;  %947 = vrot.lane.b32.xlu1 %v3187_v31, %s2686_s24  ;;  %v4780_v23 = vld [vmem:[#allocation13_spill] sm:$0xff] }
 0x104   : > { %848 = vrot.lane.b32.xlu0 %v4769_v30, %s2685_s15 }
 0x105   : > { %v3569_v36 = vpop.permute.xlu1 %688 }
 0x106   : > { %4772 = vst [vmem:[#allocation73_spill] sm:$0xff] %v3569_v36  ;;  %v3571_v6 = vpop.permute.xlu0 %686  ;;  %v4778_v36 = vld [vmem:[#allocation11_spill] sm:$0xff] }
 0x107   : > { %4773 = vst [vmem:[#allocation74_spill] sm:$0xff] %v3571_v6  ;;  %949 = vrot.lane.b32.xlu1 %v3182_v60, %s2686_s24 }
 0x108   : > { %1246 = vrot.lane.b32.xlu0 %v3182_v60, %s2689_s25 }
 0x109   : > { %v3577_v61 = vpop.permute.xlu1 %692 }
 0x10a   : > { %4774 = vst [vmem:[#allocation75_spill] sm:$0xff] %v3577_v61  ;;  %v3579_v32 = vpop.permute.xlu0 %690 }
 0x10b   : > { %4775 = vst [vmem:[#allocation76_spill] sm:$0xff] %v3579_v32  ;;  %1047 = vrot.lane.b32.xlu1 %v2877_v38, %s2687_s9  ;;  %v4779_v38 = vld [vmem:[#allocation10_spill] sm:$0xff] }
 0x10c   : > { %1045 = vrot.lane.b32.xlu0 %v2883_v40, %s2687_s9 }
 0x10d   : > { %v3585_v31 = vpop.permute.xlu1 %696 }
 0x10e   : > { %4776 = vst [vmem:[#allocation77_spill] sm:$0xff] %v3585_v31  ;;  %v3587_v30 = vpop.permute.xlu0 %694 }
 0x10f   : > { %4777 = vst [vmem:[#allocation78_spill] sm:$0xff] %v3587_v30  ;;  %850 = vrot.lane.b32.xlu1 %v4778_v36, %s2685_s15 }
 0x110   : > { %1147 = vrot.lane.b32.xlu0 %v4778_v36, %s2688_s17 }
 0x111   : > { %v3593_v60 = vpop.permute.xlu1 %734 }
 0x112   : > { %v733_v61 = vpop.permute.xlu0 %732 }
 0x113   : > { %1248 = vrot.lane.b32.xlu1 %v3200_v39, %s2689_s25 }
 0x114   : > { %1149 = vrot.lane.b32.xlu0 %v4779_v38, %s2688_s17 }
 0x115   : > { %v3599_v40 = vpop.permute.xlu1 %738 }
 0x116   : > { %v3601_v31 = vpop.permute.xlu0 %736 }
 0x117   : > { %951 = vrot.lane.b32.xlu1 %v3200_v39, %s2686_s24 }
 0x118   : > { %852 = vrot.lane.b32.xlu0 %v4779_v38, %s2685_s15 }
 0x119   : > { %v3607_v36 = vpop.permute.xlu1 %742 }
 0x11a   : > { %v3609_v30 = vpop.permute.xlu0 %740 }
 0x11b   : > { %953 = vrot.lane.b32.xlu1 %v3195_v20, %s2686_s24 }
 0x11c   : > { %1250 = vrot.lane.b32.xlu0 %v3195_v20, %s2689_s25 }
 0x11d   : > { %v3615_v32 = vpop.permute.xlu1 %746 }
 0x11e   : > { %v3617_v6 = vpop.permute.xlu0 %744 }
 0x11f   : > { %1051 = vrot.lane.b32.xlu1 %v2899_v46, %s2687_s9  ;;  %v4782_v46 = vld [vmem:[#allocation12_spill] sm:$0xff] }
 0x120   : > { %1049 = vrot.lane.b32.xlu0 %v2905_v48, %s2687_s9 }
 0x121   : > { %v3623_v39 = vpop.permute.xlu1 %750 }
 0x122   : > { %v3625_v38 = vpop.permute.xlu0 %748 }
 0x123   : > { %854 = vrot.lane.b32.xlu1 %v4780_v23, %s2685_s15 }
 0x124   : > { %1151 = vrot.lane.b32.xlu0 %v4780_v23, %s2688_s17 }
 0x125   : > { %v3631_v20 = vpop.permute.xlu1 %754 }
 0x126   : > { %4781 = vst [vmem:[#allocation11_spill] sm:$0xff] %v3631_v20  ;;  %v3633_v22 = vpop.permute.xlu0 %752 }
 0x127   : > { %1252 = vrot.lane.b32.xlu1 %v3213_v47, %s2689_s25 }
 0x128   : > { %1153 = vrot.lane.b32.xlu0 %v4782_v46, %s2688_s17 }
 0x129   : > { %v3639_v48 = vpop.permute.xlu1 %758 }
 0x12a   : > { %4783 = vst [vmem:[#allocation10_spill] sm:$0xff] %v3639_v48  ;;  %v3641_v24 = vpop.permute.xlu0 %756 }
 0x12b   : > { %4784 = vst [vmem:[#allocation13_spill] sm:$0xff] %v3641_v24  ;;  %955 = vrot.lane.b32.xlu1 %v3213_v47, %s2686_s24  ;;  %v4795_v24 = vld [vmem:[#allocation33_spill] sm:$0xff] }
 0x12c   : > { %856 = vrot.lane.b32.xlu0 %v4782_v46, %s2685_s15 }
 0x12d   : > { %v3647_v23 = vpop.permute.xlu1 %762 }
 0x12e   : > { %4785 = vst [vmem:[#allocation12_spill] sm:$0xff] %v3647_v23  ;;  %v3649_v43 = vpop.permute.xlu0 %760  ;;  %v4792_v23 = vld [vmem:[#allocation15_spill] sm:$0xff] }
 0x12f   : > { %4786 = vst [vmem:[#allocation79_spill] sm:$0xff] %v3649_v43  ;;  %957 = vrot.lane.b32.xlu1 %v4787_v42, %s2686_s24 }
 0x130   : > { %1254 = vrot.lane.b32.xlu0 %v4787_v42, %s2689_s25 }
 0x131   : > { %v3655_v10 = vpop.permute.xlu1 %766 }
 0x132   : > { %4788 = vst [vmem:[#allocation32_spill] sm:$0xff] %v3655_v10  ;;  %v3657_v48 = vpop.permute.xlu0 %764 }
 0x133   : > { %4789 = vst [vmem:[#allocation80_spill] sm:$0xff] %v3657_v48  ;;  %1055 = vrot.lane.b32.xlu1 %v2921_v54, %s2687_s9  ;;  %v4793_v54 = vld [vmem:[#allocation14_spill] sm:$0xff] }
 0x134   : > { %1053 = vrot.lane.b32.xlu0 %v2927_v56, %s2687_s9 }
 0x135   : > { %v3663_v47 = vpop.permute.xlu1 %770 }
 0x136   : > { %4790 = vst [vmem:[#allocation81_spill] sm:$0xff] %v3663_v47  ;;  %v3665_v46 = vpop.permute.xlu0 %768 }
 0x137   : > { %4791 = vst [vmem:[#allocation82_spill] sm:$0xff] %v3665_v46  ;;  %858 = vrot.lane.b32.xlu1 %v4792_v23, %s2685_s15  ;;  %v4794_v46 = vld [vmem:[#allocation5_spill] sm:$0xff] }
 0x138   : > { %1155 = vrot.lane.b32.xlu0 %v4792_v23, %s2688_s17  ;;  %v1333_v43 = vsel %vm1332_vm3, %v4794_v46, %v3309_v21 }
 0x139   : > { %v837_v42 = vpop.permute.xlu1 %836  ;;  %v1366_v1 = vsel %vm1365_vm4, %v1333_v43, %v3467_v12 }
 0x13a   : > { %v835_v10 = vpop.permute.xlu0 %834 }
 0x13b   : > { %1256 = vrot.lane.b32.xlu1 %v3226_v55, %s2689_s25 }
 0x13c   : > { %1157 = vrot.lane.b32.xlu0 %v4793_v54, %s2688_s17 }
 0x13d   : > { %v938_v48 = vpop.permute.xlu1 %937 }
 0x13e   : > { %v936_v56 = vpop.permute.xlu0 %935 }
 0x13f   : > { %959 = vrot.lane.b32.xlu1 %v3226_v55, %s2686_s24  ;;  %v1399_v55 = vsel %vm1398_vm5, %v1366_v1, %v733_v61 }
 0x140   : > { %860 = vrot.lane.b32.xlu0 %v4793_v54, %s2685_s15  ;;  %v1432_v20 = vsel %vm1431_vm6, %v1399_v55, %v835_v10 }
 0x141   : > { %v1036_v47 = vpop.permute.xlu1 %1035  ;;  %v1465_v21 = vsel %vm1464_vm7, %v1432_v20, %v936_v56 }
 0x142   : > { %v1034_v23 = vpop.permute.xlu0 %1033 }
 0x143   : > { %961 = vrot.lane.b32.xlu1 %v4795_v24, %s2686_s24  ;;  %v1498_v12 = vsel %vm1497_vm8, %v1465_v21, %v1034_v23 }
 0x144   : > { %1258 = vrot.lane.b32.xlu0 %v4795_v24, %s2689_s25  ;;  %v4796_v24 = vld [vmem:[#allocation17_spill] sm:$0xff] }
 0x145   : > { %v839_v54 = vpop.permute.xlu1 %838 }
 0x146   : > { %v1136_v25 = vpop.permute.xlu0 %1135 }
 0x147   : > { %1059 = vrot.lane.b32.xlu1 %v2943_v62, %s2687_s9  ;;  %v1531_v61 = vsel %vm1530_vm9, %v1498_v12, %v1136_v25  ;;  %v4797_v62 = vld [vmem:[#allocation6_spill] sm:$0xff] }
 0x148   : > { %1057 = vrot.lane.b32.xlu0 %v2949_v3, %s2687_s9  ;;  %v1334_v20 = vsel %vm1332_vm3, %v4797_v62, %v3326_v51  ;;  %v4798_v51 = vld [vmem:[#allocation16_spill] sm:$0xff] }
 0x149   : > { %v1237_v1 = vpop.permute.xlu1 %1236  ;;  %v1367_v3 = vsel %vm1365_vm4, %v1334_v20, %v3465_v41 }
 0x14a   : > { %v1138_v43 = vpop.permute.xlu0 %1137  ;;  %v1564_v10 = vsel %vm1563_vm10, %v1531_v61, %v1237_v1  ;;  %v1400_v46 = vsel %vm1398_vm5, %v1367_v3, %v3593_v60  ;;  %v2574_v1 = vld [vmem:[%s2784_s11 + $0x18] sm:$0xff] }
 0x14b   : > { %862 = vrot.lane.b32.xlu1 %v4796_v24, %s2685_s15  ;;  %2452 = vmatprep.mubr.msk.f32.mxu0 %vm1601_vm11, %v1564_v10  ;;  %v1433_v23 = vsel %vm1431_vm6, %v1400_v46, %v837_v42  ;;  %v4799_v10 = vld [vmem:[#allocation34_spill] sm:$0xff] }
 0x14c   : > { %1159 = vrot.lane.b32.xlu0 %v4796_v24, %s2688_s17  ;;  %v1466_v55 = vsel %vm1464_vm7, %v1433_v23, %v938_v48 }
 0x14d   : > { %v940_v25 = vpop.permute.xlu1 %939  ;;  %v1499_v21 = vsel %vm1497_vm8, %v1466_v55, %v1036_v47  ;;  %v1335_v47 = vsel %vm1332_vm3, %v2574_v1, %v3303_v53  ;;  %v4800_v55 = vld [vmem:[#allocation19_spill] sm:$0xff] }
 0x14e   : > { %v841_v56 = vpop.permute.xlu0 %840  ;;  %v1532_v41 = vsel %vm1530_vm9, %v1499_v21, %v1138_v43  ;;  %v1368_v43 = vsel %vm1365_vm4, %v1335_v47, %v3475_v15  ;;  %v2576_v47 = vld [vmem:[%s2784_s11 + $0x30] sm:$0xff] }
 0x14f   : > { %1260 = vrot.lane.b32.xlu1 %v3239_v63, %s2689_s25 }
 0x150   : > { %1161 = vrot.lane.b32.xlu0 %v4798_v51, %s2688_s17 }
 0x151   : > { %v942_v12 = vpop.permute.xlu1 %941 }
 0x152   : > { %v1239_v61 = vpop.permute.xlu0 %1238 }
 0x153   : > { %v1565_v60 = vsel %vm1563_vm10, %v1532_v41, %v1239_v61  ;;  %963 = vrot.lane.b32.xlu1 %v3239_v63, %s2686_s24  ;;  %v1401_v63 = vsel %vm1398_vm5, %v1368_v43, %v3601_v31 }
 0x154   : > { %864 = vrot.lane.b32.xlu0 %v4798_v51, %s2685_s15  ;;  %2453 = vmatmul.mubr.msk.f32.vlgmr.msra.gmra.mxu0 %vm1601_vm11, %v1565_v60  ;;  %v1434_v62 = vsel %vm1431_vm6, %v1401_v63, %v839_v54  ;;  %v2575_v54 = vld [vmem:[%s2784_s11 + $0x20] sm:$0xff] }
 0x155   : > { %v1040_v48 = vpop.permute.xlu1 %1039  ;;  %v1467_v3 = vsel %vm1464_vm7, %v1434_v62, %v940_v25 }
 0x156   : > { %v1038_v42 = vpop.permute.xlu0 %1037 }
 0x157   : > { %965 = vrot.lane.b32.xlu1 %v4799_v10, %s2686_s24  ;;  %v1500_v53 = vsel %vm1497_vm8, %v1467_v3, %v1038_v42 }
 0x158   : > { %1262 = vrot.lane.b32.xlu0 %v4799_v10, %s2689_s25 }
 0x159   : > { %v843_v24 = vpop.permute.xlu1 %842 }
 0x15a   : > { %v1140_v20 = vpop.permute.xlu0 %1139 }
 0x15b   : > { %1063 = vrot.lane.b32.xlu1 %v2965_v16, %s2687_s9  ;;  %v1533_v15 = vsel %vm1530_vm9, %v1500_v53, %v1140_v20  ;;  %v1336_v16 = vsel %vm1332_vm3, %v2575_v54, %v3320_v26  ;;  %v4801_v26 = vld [vmem:[#allocation18_spill] sm:$0xff]  ;;  %v4802_v53 = vld [vmem:[#allocation21_spill] sm:$0xff] }
 0x15c   : > { %1061 = vrot.lane.b32.xlu0 %v2971_v19, %s2687_s9  ;;  %v1369_v19 = vsel %vm1365_vm4, %v1336_v16, %v3473_v11 }
 0x15d   : > { %v1241_v46 = vpop.permute.xlu1 %1240  ;;  %v1402_v51 = vsel %vm1398_vm5, %v1369_v19, %v3599_v40 }
 0x15e   : > { %v1566_v23 = vsel %vm1563_vm10, %v1533_v15, %v1241_v46  ;;  %v1142_v31 = vpop.permute.xlu0 %1141  ;;  %v1435_v41 = vsel %vm1431_vm6, %v1402_v51, %v841_v56 }
 0x15f   : > { %866 = vrot.lane.b32.xlu1 %v4800_v55, %s2685_s15  ;;  %2455 = vmatprep.mubr.msk.f32.mxu0 %vm1601_vm11, %v1566_v23  ;;  %v1468_v61 = vsel %vm1464_vm7, %v1435_v41, %v942_v12 }
 0x160   : > { %1163 = vrot.lane.b32.xlu0 %v4800_v55, %s2688_s17  ;;  %v1501_v60 = vsel %vm1497_vm8, %v1468_v61, %v1040_v48  ;;  %v1337_v48 = vsel %vm1332_vm3, %v2576_v47, %v3340_v5  ;;  %v3843_v47 = vld [vmem:[%s2784_s11 + $0x110] sm:$0xff] }
 0x161   : > { %v944_v25 = vpop.permute.xlu1 %943  ;;  %v1534_v11 = vsel %vm1530_vm9, %v1501_v60, %v1142_v31  ;;  %v1370_v10 = vsel %vm1365_vm4, %v1337_v48, %v3483_v2 }
 0x162   : > { %v845_v21 = vpop.permute.xlu0 %844 }
 0x163   : > { %1264 = vrot.lane.b32.xlu1 %v3252_v18, %s2689_s25 }
 0x164   : > { %1165 = vrot.lane.b32.xlu0 %v4801_v26, %s2688_s17 }
 0x165   : > { %v946_v42 = vpop.permute.xlu1 %945 }
 0x166   : > { %v1243_v1 = vpop.permute.xlu0 %1242 }
 0x167   : > { %v1567_v40 = vsel %vm1563_vm10, %v1534_v11, %v1243_v1  ;;  %967 = vrot.lane.b32.xlu1 %v3252_v18, %s2686_s24  ;;  %v1403_v18 = vsel %vm1398_vm5, %v1370_v10, %v3609_v30 }
 0x168   : > { %868 = vrot.lane.b32.xlu0 %v4801_v26, %s2685_s15  ;;  %2456 = vmatmul.mubr.msk.f32.gmra.mxu0 %vm1601_vm11, %v1567_v40  ;;  %v1436_v63 = vsel %vm1431_vm6, %v1403_v18, %v843_v24  ;;  %v2577_v24 = vld [vmem:[%s2784_s11 + $0x38] sm:$0xff] }
 0x169   : > { %v1044_v56 = vpop.permute.xlu1 %1043  ;;  %v1469_v20 = vsel %vm1464_vm7, %v1436_v63, %v944_v25  ;;  %v4804_v40 = vld [vmem:[#allocation23_spill] sm:$0xff] }
 0x16a   : > { %v1042_v12 = vpop.permute.xlu0 %1041 }
 0x16b   : > { %969 = vrot.lane.b32.xlu1 %v3247_v7, %s2686_s24  ;;  %v1502_v5 = vsel %vm1497_vm8, %v1469_v20, %v1042_v12 }
 0x16c   : > { %1266 = vrot.lane.b32.xlu0 %v3247_v7, %s2689_s25 }
 0x16d   : > { %v847_v43 = vpop.permute.xlu1 %846 }
 0x16e   : > { %v1144_v62 = vpop.permute.xlu0 %1143 }
 0x16f   : > { %1067 = vrot.lane.b32.xlu1 %v2987_v34, %s2687_s9  ;;  %v1535_v2 = vsel %vm1530_vm9, %v1502_v5, %v1144_v62  ;;  %v1338_v34 = vsel %vm1332_vm3, %v2577_v24, %v3335_v52  ;;  %v4803_v52 = vld [vmem:[#allocation20_spill] sm:$0xff]  ;;  %v4805_v5 = vld [vmem:[#allocation22_spill] sm:$0xff] }
 0x170   : > { %1065 = vrot.lane.b32.xlu0 %v2993_v37, %s2687_s9  ;;  %v1371_v37 = vsel %vm1365_vm4, %v1338_v34, %v3481_v17 }
 0x171   : > { %v1245_v7 = vpop.permute.xlu1 %1244  ;;  %v1404_v46 = vsel %vm1398_vm5, %v1371_v37, %v3607_v36 }
 0x172   : > { %v1568_v3 = vsel %vm1563_vm10, %v1535_v2, %v1245_v7  ;;  %v1146_v30 = vpop.permute.xlu0 %1145  ;;  %v1437_v31 = vsel %vm1431_vm6, %v1404_v46, %v845_v21  ;;  %v2578_v21 = vld [vmem:[%s2784_s11 + $0x48] sm:$0xff] }
 0x173   : > { %870 = vrot.lane.b32.xlu1 %v4802_v53, %s2685_s15  ;;  %2458 = vmatprep.mubr.msk.f32.mxu0 %vm1601_vm11, %v1568_v3  ;;  %v1470_v55 = vsel %vm1464_vm7, %v1437_v31, %v946_v42  ;;  %v1339_v41 = vsel %vm1332_vm3, %v2578_v21, %v3348_v13  ;;  %v2581_v3 = vld [vmem:[%s2784_s11 + $0x60] sm:$0xff] }
 0x174   : > { %1167 = vrot.lane.b32.xlu0 %v4802_v53, %s2688_s17  ;;  %v1503_v54 = vsel %vm1497_vm8, %v1470_v55, %v1044_v56  ;;  %v1372_v61 = vsel %vm1365_vm4, %v1339_v41, %v3491_v33  ;;  %v2579_v56 = vld [vmem:[%s2784_s11 + $0x50] sm:$0xff]  ;;  %v3886_v31 = vld [vmem:[%s2784_s11 + $0x120] sm:$0xff]  ;;  %v2583_v55 = vld [vmem:[%s2784_s11 + $0x68] sm:$0xff] }
 0x175   : > { %v948_v15 = vpop.permute.xlu1 %947  ;;  %v1536_v17 = vsel %vm1530_vm9, %v1503_v54, %v1146_v30  ;;  %v1340_v12 = vsel %vm1332_vm3, %v2579_v56, %v3346_v8  ;;  %v1341_v30 = vsel %vm1332_vm3, %v2581_v3, %v3356_v45 }
 0x176   : > { %v849_v23 = vpop.permute.xlu0 %848  ;;  %v1374_v53 = vsel %vm1365_vm4, %v1341_v30, %v3499_v0 }
 0x177   : > { %1268 = vrot.lane.b32.xlu1 %v3265_v35, %s2689_s25  ;;  %v1407_v24 = vsel %vm1398_vm5, %v1374_v53, %v3625_v38  ;;  %v2589_v53 = vld [vmem:[%s2784_s11 + $0x90] sm:$0xff] }
 0x178   : > { %1169 = vrot.lane.b32.xlu0 %v4803_v52, %s2688_s17 }
 0x179   : > { %v950_v16 = vpop.permute.xlu1 %949 }
 0x17a   : > { %v1247_v19 = vpop.permute.xlu0 %1246 }
 0x17b   : > { %v1569_v36 = vsel %vm1563_vm10, %v1536_v17, %v1247_v19  ;;  %971 = vrot.lane.b32.xlu1 %v3265_v35, %s2686_s24  ;;  %v1405_v35 = vsel %vm1398_vm5, %v1372_v61, %v3617_v6 }
 0x17c   : > { %872 = vrot.lane.b32.xlu0 %v4803_v52, %s2685_s15  ;;  %2459 = vmatmul.mubr.msk.f32.gmra.mxu0 %vm1601_vm11, %v1569_v36  ;;  %v1438_v60 = vsel %vm1431_vm6, %v1405_v35, %v847_v43  ;;  %v1342_v52 = vsel %vm1332_vm3, %v2583_v55, %v3354_v57  ;;  %v4806_v36 = vld [vmem:[#allocation25_spill] sm:$0xff]  ;;  %v4814_v55 = vld [vmem:[#allocation36_spill] sm:$0xff] }
 0x17d   : > { %v1048_v25 = vpop.permute.xlu1 %1047  ;;  %v1471_v13 = vsel %vm1464_vm7, %v1438_v60, %v948_v15  ;;  %v3905_v57 = vld [vmem:[%s2784_s11 + $0x128] sm:$0xff] }
 0x17e   : > { %v1046_v51 = vpop.permute.xlu0 %1045 }
 0x17f   : > { %973 = vrot.lane.b32.xlu1 %v3260_v44, %s2686_s24  ;;  %v1504_v11 = vsel %vm1497_vm8, %v1471_v13, %v1046_v51  ;;  %v4807_v13 = vld [vmem:[#allocation24_spill] sm:$0xff] }
 0x180   : > { %1270 = vrot.lane.b32.xlu0 %v3260_v44, %s2689_s25 }
 0x181   : > { %v851_v26 = vpop.permute.xlu1 %850 }
 0x182   : > { %v1148_v42 = vpop.permute.xlu0 %1147  ;;  %v1440_v37 = vsel %vm1431_vm6, %v1407_v24, %v851_v26  ;;  %v2585_v26 = vld [vmem:[%s2784_s11 + $0x78] sm:$0xff]  ;;  %v4811_v24 = vld [vmem:[#allocation42_spill] sm:$0xff] }
 0x183   : > { %772 = vrot.lane.b32.xlu1 %v3015_v59, %s2684_s14  ;;  %v1537_v44 = vsel %vm1530_vm9, %v1504_v11, %v1148_v42  ;;  %v1343_v60 = vsel %vm1332_vm3, %v2585_v26, %v3364_v27 }
 0x184   : > { %1069 = vrot.lane.b32.xlu0 %v3015_v59, %s2687_s9  ;;  %v1373_v59 = vsel %vm1365_vm4, %v1340_v12, %v3489_v28  ;;  %v1376_v42 = vsel %vm1365_vm4, %v1343_v60, %v3507_v14  ;;  %v2586_v12 = vld [vmem:[%s2784_s11 + $0x80] sm:$0xff]  ;;  %v4819_v60 = vld [vmem:[#allocation35_spill] sm:$0xff] }
 0x185   : > { %v1249_v33 = vpop.permute.xlu1 %1248  ;;  %v1406_v10 = vsel %vm1398_vm5, %v1373_v59, %v3615_v32  ;;  %v1409_v11 = vsel %vm1398_vm5, %v1376_v42, %v3633_v22  ;;  %v4808_v59 = vld [vmem:[#allocation61_spill] sm:$0xff] }
 0x186   : > { %v1570_v6 = vsel %vm1563_vm10, %v1537_v44, %v1249_v33  ;;  %v1150_v1 = vpop.permute.xlu0 %1149  ;;  %v1439_v43 = vsel %vm1431_vm6, %v1406_v10, %v849_v23 }
 0x187   : > { %1171 = vrot.lane.b32.xlu1 %v4804_v40, %s2688_s17  ;;  %2461 = vmatprep.mubr.msk.f32.mxu0 %vm1601_vm11, %v1570_v6  ;;  %v1472_v8 = vsel %vm1464_vm7, %v1439_v43, %v950_v16 }
 0x188   : > { %1071 = vrot.lane.b32.xlu0 %v3843_v47, %s2687_s9  ;;  %v1505_v63 = vsel %vm1497_vm8, %v1472_v8, %v1048_v25 }
 0x189   : > { %v952_v48 = vpop.permute.xlu1 %951  ;;  %v1538_v28 = vsel %vm1530_vm9, %v1505_v63, %v1150_v1 }
 0x18a   : > { %v853_v18 = vpop.permute.xlu0 %852  ;;  %v1473_v45 = vsel %vm1464_vm7, %v1440_v37, %v952_v48  ;;  %v4812_v37 = vld [vmem:[#allocation63_spill] sm:$0xff] }
 0x18b   : > { %874 = vrot.lane.b32.xlu1 %v4804_v40, %s2685_s15 }
 0x18c   : > { %774 = vrot.lane.b32.xlu0 %v3843_v47, %s2684_s14 }
 0x18d   : > { %v954_v62 = vpop.permute.xlu1 %953 }
 0x18e   : > { %v1251_v20 = vpop.permute.xlu0 %1250 }
 0x18f   : > { %v1571_v32 = vsel %vm1563_vm10, %v1538_v28, %v1251_v20  ;;  %1272 = vrot.lane.b32.xlu1 %v3278_v58, %s2689_s25 }
 0x190   : > { %1173 = vrot.lane.b32.xlu0 %v4805_v5, %s2688_s17  ;;  %2462 = vmatmul.mubr.msk.f32.gmra.mxu0 %vm1601_vm11, %v1571_v32 }
 0x191   : > { %v1052_v2 = vpop.permute.xlu1 %1051 }
 0x192   : > { %v1050_v7 = vpop.permute.xlu0 %1049 }
 0x193   : > { %975 = vrot.lane.b32.xlu1 %v3278_v58, %s2686_s24  ;;  %v1506_v58 = vsel %vm1497_vm8, %v1473_v45, %v1050_v7  ;;  %v3964_v7 = vld [vmem:[%s2784_s11 + $0x140] sm:$0xff] }
 0x194   : > { %876 = vrot.lane.b32.xlu0 %v4805_v5, %s2685_s15  ;;  %v4813_v45 = vld [vmem:[#allocation13_spill] sm:$0xff] }
 0x195   : > { %v855_v34 = vpop.permute.xlu1 %854 }
 0x196   : > { %v1152_v15 = vpop.permute.xlu0 %1151  ;;  %v1442_v33 = vsel %vm1431_vm6, %v1409_v11, %v855_v34  ;;  %v1345_v34 = vsel %vm1332_vm3, %v2589_v53, %v4811_v24  ;;  %v4826_v24 = vld [vmem:[#allocation28_spill] sm:$0xff] }
 0x197   : > { %977 = vrot.lane.b32.xlu1 %v3273_v49, %s2686_s24  ;;  %v1539_v0 = vsel %vm1530_vm9, %v1506_v58, %v1152_v15  ;;  %v1378_v15 = vsel %vm1365_vm4, %v1345_v34, %v4812_v37  ;;  %v4827_v34 = vld [vmem:[#allocation7_spill] sm:$0xff] }
 0x198   : > { %1274 = vrot.lane.b32.xlu0 %v3273_v49, %s2689_s25  ;;  %v1375_v49 = vsel %vm1365_vm4, %v1342_v52, %v3497_v9  ;;  %v1411_v58 = vsel %vm1398_vm5, %v1378_v15, %v4813_v45  ;;  %v4828_v45 = vld [vmem:[#allocation12_spill] sm:$0xff] }
 0x199   : > { %v1253_v46 = vpop.permute.xlu1 %1252  ;;  %v1408_v16 = vsel %vm1398_vm5, %v1375_v49, %v3623_v39  ;;  %v4815_v49 = vld [vmem:[#allocation26_spill] sm:$0xff] }
 0x19a   : > { %v1572_v38 = vsel %vm1563_vm10, %v1539_v0, %v1253_v46  ;;  %v1154_v23 = vpop.permute.xlu0 %1153  ;;  %v1441_v19 = vsel %vm1431_vm6, %v1408_v16, %v853_v18  ;;  %v4809_v18 = vld [vmem:[#allocation11_spill] sm:$0xff] }
 0x19b   : > { %776 = vrot.lane.b32.xlu1 %v3886_v31, %s2684_s14  ;;  %2464 = vmatprep.mubr.msk.f32.mxu0 %vm1601_vm11, %v1572_v38  ;;  %v1474_v25 = vsel %vm1464_vm7, %v1441_v19, %v954_v62  ;;  %v3951_v62 = vld [vmem:[%s2784_s11 + $0x138] sm:$0xff] }
 0x19c   : > { %1073 = vrot.lane.b32.xlu0 %v3886_v31, %s2687_s9  ;;  %v1507_v9 = vsel %vm1497_vm8, %v1474_v25, %v1052_v2  ;;  %v4810_v2 = vld [vmem:[#allocation27_spill] sm:$0xff]  ;;  %v4816_v25 = vld [vmem:[#allocation41_spill] sm:$0xff] }
 0x19d   : > { %v956_v54 = vpop.permute.xlu1 %955  ;;  %v1540_v21 = vsel %vm1530_vm9, %v1507_v9, %v1154_v23 }
 0x19e   : > { %v857_v17 = vpop.permute.xlu0 %856  ;;  %v1475_v1 = vsel %vm1464_vm7, %v1442_v33, %v956_v54 }
 0x19f   : > { %1175 = vrot.lane.b32.xlu1 %v4806_v36, %s2688_s17 }
 0x1a0   : > { %1075 = vrot.lane.b32.xlu0 %v3905_v57, %s2687_s9 }
 0x1a1   : > { %v958_v51 = vpop.permute.xlu1 %957 }
 0x1a2   : > { %v1255_v39 = vpop.permute.xlu0 %1254 }
 0x1a3   : > { %v1573_v41 = vsel %vm1563_vm10, %v1540_v21, %v1255_v39  ;;  %878 = vrot.lane.b32.xlu1 %v4806_v36, %s2685_s15  ;;  %v2590_v36 = vld [vmem:[%s2784_s11 + $0x98] sm:$0xff] }
 0x1a4   : > { %778 = vrot.lane.b32.xlu0 %v3905_v57, %s2684_s14  ;;  %2465 = vmatmul.mubr.msk.f32.gmra.mxu0 %vm1601_vm11, %v1573_v41  ;;  %v1346_v9 = vsel %vm1332_vm3, %v2590_v36, %v4816_v25  ;;  %v4818_v41 = vld [vmem:[#allocation10_spill] sm:$0xff]  ;;  %v2595_v36 = vld [vmem:[%s2784_s11 + $0xc0] sm:$0xff] }
 0x1a5   : > { %v1056_v61 = vpop.permute.xlu1 %1055  ;;  %v4830_v25 = vld [vmem:[#allocation46_spill] sm:$0xff] }
 0x1a6   : > { %v1054_v35 = vpop.permute.xlu0 %1053 }
 0x1a7   : > { %1276 = vrot.lane.b32.xlu1 %v3291_v29, %s2689_s25  ;;  %v1508_v27 = vsel %vm1497_vm8, %v1475_v1, %v1054_v35  ;;  %v4011_v1 = vld [vmem:[%s2784_s11 + $0x150] sm:$0xff] }
 0x1a8   : > { %1177 = vrot.lane.b32.xlu0 %v4807_v13, %s2688_s17 }
 0x1a9   : > { %v859_v44 = vpop.permute.xlu1 %858 }
 0x1aa   : > { %v1156_v6 = vpop.permute.xlu0 %1155  ;;  %v1444_v46 = vsel %vm1431_vm6, %v1411_v58, %v859_v44 }
 0x1ab   : > { %979 = vrot.lane.b32.xlu1 %v3291_v29, %s2686_s24  ;;  %v1541_v14 = vsel %vm1530_vm9, %v1508_v27, %v1156_v6  ;;  %v1344_v29 = vsel %vm1332_vm3, %v2586_v12, %v3362_v50  ;;  %v4821_v12 = vld [vmem:[#allocation29_spill] sm:$0xff] }
 0x1ac   : > { %880 = vrot.lane.b32.xlu0 %v4807_v13, %s2685_s15  ;;  %v1377_v48 = vsel %vm1365_vm4, %v1344_v29, %v4808_v59  ;;  %v4822_v29 = vld [vmem:[#allocation64_spill] sm:$0xff] }
 0x1ad   : > { %v1257_v40 = vpop.permute.xlu1 %1256  ;;  %v1410_v43 = vsel %vm1398_vm5, %v1377_v48, %v4809_v18  ;;  %v4026_v48 = vld [vmem:[%s2784_s11 + $0x158] sm:$0xff] }
 0x1ae   : > { %v1574_v22 = vsel %vm1563_vm10, %v1541_v14, %v1257_v40  ;;  %v1158_v56 = vpop.permute.xlu0 %1157  ;;  %v1443_v63 = vsel %vm1431_vm6, %v1410_v43, %v857_v17  ;;  %v2592_v40 = vld [vmem:[%s2784_s11 + $0xa8] sm:$0xff] }
 0x1af   : > { %981 = vrot.lane.b32.xlu1 %v3286_v4, %s2686_s24  ;;  %2467 = vmatprep.mubr.msk.f32.mxu0 %vm1601_vm11, %v1574_v22  ;;  %v1476_v50 = vsel %vm1464_vm7, %v1443_v63, %v958_v51  ;;  %v4817_v51 = vld [vmem:[#allocation62_spill] sm:$0xff]  ;;  %v4820_v22 = vld [vmem:[#allocation44_spill] sm:$0xff] }
 0x1b0   : > { %1278 = vrot.lane.b32.xlu0 %v3286_v4, %s2689_s25  ;;  %v1509_v4 = vsel %vm1497_vm8, %v1476_v50, %v1056_v61  ;;  %v1379_v21 = vsel %vm1365_vm4, %v1346_v9, %v4817_v51  ;;  %v1349_v9 = vsel %vm1332_vm3, %v2595_v36, %v4830_v25  ;;  %v4071_v51 = vld [vmem:[%s2784_s11 + $0x168] sm:$0xff]  ;;  %v324_v36 = vld [vmem:[%s2784_s11 + $0x190] sm:$0x3] }
 0x1b1   : > { %v960_v10 = vpop.permute.xlu1 %959  ;;  %v1542_v20 = vsel %vm1530_vm9, %v1509_v4, %v1158_v56  ;;  %v1412_v61 = vsel %vm1398_vm5, %v1379_v21, %v4818_v41  ;;  %v1347_v56 = vsel %vm1332_vm3, %v2592_v40, %v4820_v22  ;;  %v4831_v21 = vld [vmem:[#allocation66_spill] sm:$0xff]  ;;  %v4832_v41 = vld [vmem:[#allocation80_spill] sm:$0xff]  ;;  %v4834_v22 = vld [vmem:[#allocation45_spill] sm:$0xff] }
 0x1b2   : > { %v861_v8 = vpop.permute.xlu0 %860  ;;  %v1477_v23 = vsel %vm1464_vm7, %v1444_v46, %v960_v10  ;;  %v1380_v59 = vsel %vm1365_vm4, %v1347_v56, %v4822_v29  ;;  %v4823_v10 = vld [vmem:[#allocation79_spill] sm:$0xff]  ;;  %v2598_v40 = vld [vmem:[%s2784_s11 + $0xc8] sm:$0xff] }
 0x1b3   : > { %780 = vrot.lane.b32.xlu1 %v3951_v62, %s2684_s14  ;;  %v1445_v26 = vsel %vm1431_vm6, %v1412_v61, %v861_v8  ;;  %v1413_v18 = vsel %vm1398_vm5, %v1380_v59, %v4823_v10  ;;  %v1350_v56 = vsel %vm1332_vm3, %v2598_v40, %v4834_v22  ;;  %v4836_v10 = vld [vmem:[#allocation32_spill] sm:$0xff]  ;;  %v4845_v22 = vld [vmem:[#allocation81_spill] sm:$0xff] }
 0x1b4   : > { %1077 = vrot.lane.b32.xlu0 %v3951_v62, %s2687_s9 }
 0x1b5   : > { %v962_v28 = vpop.permute.xlu1 %961 }
 0x1b6   : > { %v1259_v32 = vpop.permute.xlu0 %1258  ;;  %v1478_v42 = vsel %vm1464_vm7, %v1445_v26, %v962_v28 }
 0x1b7   : > { %v1575_v5 = vsel %vm1563_vm10, %v1542_v20, %v1259_v32  ;;  %1179 = vrot.lane.b32.xlu1 %v4810_v2, %s2688_s17 }
 0x1b8   : > { %1079 = vrot.lane.b32.xlu0 %v3964_v7, %s2687_s9  ;;  %2468 = vmatmul.mubr.msk.f32.gmra.mxu0 %vm1601_vm11, %v1575_v5 }
 0x1b9   : > { %v1060_v3 = vpop.permute.xlu1 %1059 }
 0x1ba   : > { %v1058_v30 = vpop.permute.xlu0 %1057  ;;  %v1511_v13 = vsel %vm1497_vm8, %v1478_v42, %v1060_v3  ;;  %v2594_v3 = vld [vmem:[%s2784_s11 + $0xb0] sm:$0xff] }
 0x1bb   : > { %882 = vrot.lane.b32.xlu1 %v4810_v2, %s2685_s15  ;;  %v1510_v52 = vsel %vm1497_vm8, %v1477_v23, %v1058_v30  ;;  %v4824_v2 = vld [vmem:[#allocation38_spill] sm:$0xff]  ;;  %v4825_v30 = vld [vmem:[#allocation43_spill] sm:$0xff] }
 0x1bc   : > { %782 = vrot.lane.b32.xlu0 %v3964_v7, %s2684_s14  ;;  %v1348_v53 = vsel %vm1332_vm3, %v2594_v3, %v4825_v30  ;;  %v322_v30 = vld [vmem:[%s2784_s11 + $0x180] sm:$0xff] }
 0x1bd   : > { %v863_v0 = vpop.permute.xlu1 %862  ;;  %v1381_v37 = vsel %vm1365_vm4, %v1348_v53, %v4827_v34  ;;  %v323_v53 = vld [vmem:[%s2784_s11 + $0x188] sm:$0xff]  ;;  %v4839_v34 = vld [vmem:[#allocation39_spill] sm:$0xff] }
 0x1be   : > { %v1160_v38 = vpop.permute.xlu0 %1159  ;;  %v1446_v8 = vsel %vm1431_vm6, %v1413_v18, %v863_v0  ;;  %v1414_v58 = vsel %vm1398_vm5, %v1381_v37, %v4828_v45  ;;  %v829_v37 = vrot.slane %v322_v30, 1 }
 0x1bf   : > { %1280 = vrot.lane.b32.xlu1 %v4814_v55, %s2689_s25  ;;  %v1543_v54 = vsel %vm1530_vm9, %v1510_v52, %v1160_v38 }
 0x1c0   : > { %1181 = vrot.lane.b32.xlu0 %v4815_v49, %s2688_s17 }
 0x1c1   : > { %v1261_v16 = vpop.permute.xlu1 %1260 }
 0x1c2   : > { %v1576_v17 = vsel %vm1563_vm10, %v1543_v54, %v1261_v16  ;;  %v1162_v19 = vpop.permute.xlu0 %1161  ;;  %v4829_v16 = vld [vmem:[#allocation37_spill] sm:$0xff] }
 0x1c3   : > { %983 = vrot.lane.b32.xlu1 %v4814_v55, %s2686_s24  ;;  %2470 = vmatprep.mubr.msk.f32.mxu0 %vm1601_vm11, %v1576_v17  ;;  %v1544_v44 = vsel %vm1530_vm9, %v1511_v13, %v1162_v19  ;;  %v4833_v13 = vld [vmem:[#allocation31_spill] sm:$0xff] }
 0x1c4   : > { %884 = vrot.lane.b32.xlu0 %v4815_v49, %s2685_s15 }
 0x1c5   : > { %v964_v39 = vpop.permute.xlu1 %963 }
 0x1c6   : > { %v865_v35 = vpop.permute.xlu0 %864  ;;  %v1479_v50 = vsel %vm1464_vm7, %v1446_v8, %v964_v39  ;;  %v1382_v39 = vsel %vm1365_vm4, %v1349_v9, %v4831_v21  ;;  %v930_v21 = vrot.slane %v322_v30, 2 }
 0x1c7   : > { %985 = vrot.lane.b32.xlu1 %v4819_v60, %s2686_s24  ;;  %v1447_v46 = vsel %vm1431_vm6, %v1414_v58, %v865_v35  ;;  %v1415_v61 = vsel %vm1398_vm5, %v1382_v39, %v4832_v41  ;;  %v931_v39 = vrot.slane %v323_v53, 2 }
 0x1c8   : > { %1282 = vrot.lane.b32.xlu0 %v4819_v60, %s2689_s25 }
 0x1c9   : > { %v966_v11 = vpop.permute.xlu1 %965 }
 0x1ca   : > { %v1263_v33 = vpop.permute.xlu0 %1262  ;;  %v1480_v38 = vsel %vm1464_vm7, %v1447_v46, %v966_v11  ;;  %v4840_v46 = vld [vmem:[#allocation48_spill] sm:$0xff] }
 0x1cb   : > { %v1577_v6 = vsel %vm1563_vm10, %v1544_v44, %v1263_v33  ;;  %784 = vrot.lane.b32.xlu1 %v4011_v1, %s2684_s14  ;;  %v4087_v44 = vld [vmem:[%s2784_s11 + $0x170] sm:$0xff] }
 0x1cc   : > { %1081 = vrot.lane.b32.xlu0 %v4011_v1, %s2687_s9  ;;  %2471 = vmatmul.mubr.msk.f32.gmra.mxu0 %vm1601_vm11, %v1577_v6 }
 0x1cd   : > { %v1064_v27 = vpop.permute.xlu1 %1063 }
 0x1ce   : > { %v1062_v14 = vpop.permute.xlu0 %1061  ;;  %v1513_v23 = vsel %vm1497_vm8, %v1480_v38, %v1064_v27 }
 0x1cf   : > { %1183 = vrot.lane.b32.xlu1 %v4821_v12, %s2688_s17  ;;  %v1512_v4 = vsel %vm1497_vm8, %v1479_v50, %v1062_v14 }
 0x1d0   : > { %1083 = vrot.lane.b32.xlu0 %v4026_v48, %s2687_s9 }
 0x1d1   : > { %v867_v43 = vpop.permute.xlu1 %866 }
 0x1d2   : > { %v1164_v63 = vpop.permute.xlu0 %1163  ;;  %v1448_v26 = vsel %vm1431_vm6, %v1415_v61, %v867_v43 }
 0x1d3   : > { %886 = vrot.lane.b32.xlu1 %v4821_v12, %s2685_s15  ;;  %v1545_v28 = vsel %vm1530_vm9, %v1512_v4, %v1164_v63  ;;  %v4835_v12 = vld [vmem:[#allocation65_spill] sm:$0xff]  ;;  %v4837_v63 = vld [vmem:[#allocation40_spill] sm:$0xff]  ;;  %v4838_v4 = vld [vmem:[#allocation30_spill] sm:$0xff] }
 0x1d4   : > { %786 = vrot.lane.b32.xlu0 %v4026_v48, %s2684_s14  ;;  %v1383_v29 = vsel %vm1365_vm4, %v1350_v56, %v4835_v12 }
 0x1d5   : > { %v1265_v20 = vpop.permute.xlu1 %1264  ;;  %v1416_v18 = vsel %vm1398_vm5, %v1383_v29, %v4836_v10  ;;  %v933_v10 = vrot.slane %v324_v36, 2 }
 0x1d6   : > { %v1578_v32 = vsel %vm1563_vm10, %v1545_v28, %v1265_v20  ;;  %v1166_v5 = vpop.permute.xlu0 %1165 }
 0x1d7   : > { %1284 = vrot.lane.b32.xlu1 %v4824_v2, %s2689_s25  ;;  %2473 = vmatprep.mubr.msk.f32.mxu0 %vm1601_vm11, %v1578_v32  ;;  %v1546_v52 = vsel %vm1530_vm9, %v1513_v23, %v1166_v5  ;;  %v4841_v23 = vld [vmem:[#allocation68_spill] sm:$0xff] }
 0x1d8   : > { %1185 = vrot.lane.b32.xlu0 %v4826_v24, %s2688_s17 }
 0x1d9   : > { %v968_v15 = vpop.permute.xlu1 %967 }
 0x1da   : > { %v869_v0 = vpop.permute.xlu0 %868  ;;  %v1481_v42 = vsel %vm1464_vm7, %v1448_v26, %v968_v15  ;;  %v830_v15 = vrot.slane %v323_v53, 1  ;;  %v832_v26 = vrot.slane %v324_v36, 1 }
 0x1db   : > { %987 = vrot.lane.b32.xlu1 %v4824_v2, %s2686_s24  ;;  %v1449_v8 = vsel %vm1431_vm6, %v1416_v18, %v869_v0  ;;  %v2599_v0 = vld [vmem:[%s2784_s11 + $0xd8] sm:$0xff] }
 0x1dc   : > { %888 = vrot.lane.b32.xlu0 %v4826_v24, %s2685_s15  ;;  %v1351_v38 = vsel %vm1332_vm3, %v2599_v0, %v4840_v46  ;;  %v833_v40 = vsel %vm376_vm0, %v830_v15, %v832_v26  ;;  %v4847_v46 = vld [vmem:[#allocation70_spill] sm:$0xff] }
 0x1dd   : > { %v970_v55 = vpop.permute.xlu1 %969 }
 0x1de   : > { %v1267_v49 = vpop.permute.xlu0 %1266  ;;  %v1482_v50 = vsel %vm1464_vm7, %v1449_v8, %v970_v55  ;;  %v1384_v55 = vsel %vm1365_vm4, %v1351_v38, %v4841_v23 }
 0x1df   : > { %v1579_v54 = vsel %vm1563_vm10, %v1546_v52, %v1267_v49  ;;  %989 = vrot.lane.b32.xlu1 %v4829_v16, %s2686_s24  ;;  %v831_v52 = vsel %vm376_vm0, %v829_v37, %v830_v15  ;;  %v4842_v49 = vld [vmem:[#allocation82_spill] sm:$0xff]  ;;  %v4186_v15 = vld [vmem:[%s4622_s2] ss:$0 sm:$0xff] }
 0x1e0   : > { %1286 = vrot.lane.b32.xlu0 %v4829_v16, %s2689_s25  ;;  %2474 = vmatmul.mubr.msk.f32.gmra.mxu0 %vm1601_vm11, %v1579_v54  ;;  %v1417_v54 = vsel %vm1398_vm5, %v1384_v55, %v4842_v49 }
 0x1e1   : > { %v1068_v17 = vpop.permute.xlu1 %1067 }
 0x1e2   : > { %v1066_v19 = vpop.permute.xlu0 %1065  ;;  %v1515_v28 = vsel %vm1497_vm8, %v1482_v50, %v1068_v17 }
 0x1e3   : > { %788 = vrot.lane.b32.xlu1 %v4071_v51, %s2684_s14  ;;  %v1514_v11 = vsel %vm1497_vm8, %v1481_v42, %v1066_v19  ;;  %v2600_v42 = vld [vmem:[%s2784_s11 + $0xe0] sm:$0xff] }
 0x1e4   : > { %1085 = vrot.lane.b32.xlu0 %v4071_v51, %s2687_s9 }
 0x1e5   : > { %v871_v35 = vpop.permute.xlu1 %870 }
 0x1e6   : > { %v1168_v60 = vpop.permute.xlu0 %1167  ;;  %v1450_v17 = vsel %vm1431_vm6, %v1417_v54, %v871_v35 }
 0x1e7   : > { %1187 = vrot.lane.b32.xlu1 %v4833_v13, %s2688_s17  ;;  %v1547_v33 = vsel %vm1530_vm9, %v1514_v11, %v1168_v60 }
 0x1e8   : > { %1087 = vrot.lane.b32.xlu0 %v4087_v44, %s2687_s9 }
 0x1e9   : > { %v1269_v6 = vpop.permute.xlu1 %1268 }
 0x1ea   : > { %v1170_v27 = vpop.permute.xlu0 %1169  ;;  %v1580_v14 = vsel %vm1563_vm10, %v1547_v33, %v1269_v6  ;;  %v932_v33 = vsel %vm553_vm1, %v930_v21, %v931_v39  ;;  %v4844_v6 = vld [vmem:[#allocation67_spill] sm:$0xff] }
 0x1eb   : > { %890 = vrot.lane.b32.xlu1 %v4833_v13, %s2685_s15  ;;  %2476 = vmatprep.mubr.msk.f32.mxu1 %vm1601_vm11, %v1580_v14  ;;  %v1548_v32 = vsel %vm1530_vm9, %v1515_v28, %v1170_v27  ;;  %v4843_v13 = vld [vmem:[#allocation47_spill] sm:$0xff] }
 0x1ec   : > { %790 = vrot.lane.b32.xlu0 %v4087_v44, %s2684_s14  ;;  %v1352_v11 = vsel %vm1332_vm3, %v2600_v42, %v4843_v13 }
 0x1ed   : > { %v972_v59 = vpop.permute.xlu1 %971  ;;  %v1385_v27 = vsel %vm1365_vm4, %v1352_v11, %v4844_v6 }
 0x1ee   : > { %v873_v43 = vpop.permute.xlu0 %872  ;;  %v1483_v25 = vsel %vm1464_vm7, %v1450_v17, %v972_v59  ;;  %v1418_v56 = vsel %vm1398_vm5, %v1385_v27, %v4845_v22 }
 0x1ef   : > { %1288 = vrot.lane.b32.xlu1 %v4837_v63, %s2689_s25  ;;  %v1451_v29 = vsel %vm1431_vm6, %v1418_v56, %v873_v43  ;;  %v934_v43 = vsel %vm553_vm1, %v931_v39, %v933_v10 }
 0x1f0   : > { %1189 = vrot.lane.b32.xlu0 %v4838_v4, %s2688_s17 }
 0x1f1   : > { %v974_v20 = vpop.permute.xlu1 %973 }
 0x1f2   : > { %v1271_v5 = vpop.permute.xlu0 %1270  ;;  %v1484_v59 = vsel %vm1464_vm7, %v1451_v29, %v974_v20  ;;  %v326_v20 = vld [vmem:[%s2784_s11 + $0x1a0] sm:$0xff]  ;;  %v2602_v29 = vld [vmem:[%s2784_s11 + $0xf8] sm:$0xff] }
 0x1f3   : > { %v1581_v2 = vsel %vm1563_vm10, %v1548_v32, %v1271_v5  ;;  %991 = vrot.lane.b32.xlu1 %v4837_v63, %s2686_s24  ;;  %v327_v32 = vld [vmem:[%s2784_s11 + $0x1a8] sm:$0x3]  ;;  %v1232_v23 = vrot.slane %v326_v20, 2 }
 0x1f4   : > { %892 = vrot.lane.b32.xlu0 %v4838_v4, %s2685_s15  ;;  %2477 = vmatmul.mubr.msk.f32.vlgmr.msra.gmra.mxu1 %vm1601_vm11, %v1581_v2  ;;  %v325_v2 = vld [vmem:[%s2784_s11 + $0x198] sm:$0xff]  ;;  %v1234_v54 = vrot.slane %v327_v32, 2 }
 0x1f5   : > { %v4119_v3 = vpop.permute.xlu1 %772 }
 0x1f6   : > { %v1070_v24 = vpop.permute.xlu0 %1069 }
 0x1f7   : > { %993 = vrot.lane.b32.xlu1 %v4839_v34, %s2686_s24  ;;  %v1516_v9 = vsel %vm1497_vm8, %v1483_v25, %v1070_v24  ;;  %v1231_v25 = vrot.slane %v325_v2, 2 }
 0x1f8   : > { %1290 = vrot.lane.b32.xlu0 %v4839_v34, %s2689_s25  ;;  %v1130_v34 = vrot.slane %v325_v2, 1 }
 0x1f9   : > { %v1172_v45 = vpop.permute.xlu1 %1171  ;;  %v1233_v6 = vsel %vm553_vm1, %v1231_v25, %v1232_v23  ;;  %v4851_v25 = vld [vmem:[#allocation71_spill] sm:$0xff] }
 0x1fa   : > { %v1072_v58 = vpop.permute.xlu0 %1071  ;;  %v1549_v41 = vsel %vm1530_vm9, %v1516_v9, %v1172_v45  ;;  %v2601_v45 = vld [vmem:[%s2784_s11 + $0xf0] sm:$0xff] }
 0x1fb   : > { %792 = vrot.lane.b32.xlu1 %v322_v30, %s2684_s14  ;;  %v1517_v18 = vsel %vm1497_vm8, %v1484_v59, %v1072_v58  ;;  %v4846_v58 = vld [vmem:[#allocation50_spill] sm:$0xff]  ;;  %v4848_v59 = vld [vmem:[#allocation49_spill] sm:$0xff] }
 0x1fc   : > { %1089 = vrot.lane.b32.xlu0 %v322_v30, %s2687_s9  ;;  %v1131_v30 = vrot.slane %v326_v20, 1  ;;  %v1353_v0 = vsel %vm1332_vm3, %v2601_v45, %v4846_v58  ;;  %v1354_v10 = vsel %vm1332_vm3, %v2602_v29, %v4848_v59  ;;  %v4852_v59 = vld [vmem:[#allocation51_spill] sm:$0xff] }
 0x1fd   : > { %v4137_v16 = vpop.permute.xlu1 %874  ;;  %v1386_v38 = vsel %vm1365_vm4, %v1353_v0, %v4847_v46 }
 0x1fe   : > { %v4140_v19 = vpop.permute.xlu0 %774  ;;  %v1419_v17 = vsel %vm1398_vm5, %v1386_v38, %v4119_v3  ;;  %v1132_v21 = vsel %vm376_vm0, %v1130_v34, %v1131_v30 }
 0x1ff   : > { %1191 = vrot.lane.b32.xlu1 %v831_v52, %s2688_s17  ;;  %v1452_v39 = vsel %vm1431_vm6, %v1419_v17, %v4137_v16 }
 0x200   : > { %1091 = vrot.lane.b32.xlu0 %v323_v53, %s2687_s9 }
 0x201   : > { %v1273_v61 = vpop.permute.xlu1 %1272 }
 0x202   : > { %v1582_v35 = vsel %vm1563_vm10, %v1549_v41, %v1273_v61  ;;  %v1174_v60 = vpop.permute.xlu0 %1173 }
 0x203   : > { %894 = vrot.lane.b32.xlu1 %v831_v52, %s2685_s15  ;;  %2479 = vmatprep.mubr.msk.f32.mxu1 %vm1601_vm11, %v1582_v35  ;;  %v1550_v63 = vsel %vm1530_vm9, %v1517_v18, %v1174_v60  ;;  %v4198_v52 = vld [vmem:[%s4623_s3] ss:$0 sm:$0xff]  ;;  %v1235_v60 = vsel %vm553_vm1, %v1232_v23, %v1234_v54 }
 0x204   : > { %794 = vrot.lane.b32.xlu0 %v323_v53, %s2684_s14  ;;  %v1133_v53 = vrot.slane %v327_v32, 1  ;;  %s4580_s14 = scalar_lea.hbm %s4625_s5, %s2401_s12 }
 0x205   : > { %v976_v14 = vpop.permute.xlu1 %975 }
 0x206   : > { %v4161_v12 = vpop.permute.xlu0 %876  ;;  %v1134_v49 = vsel %vm376_vm0, %v1131_v30, %v1133_v53  ;;  %v1485_v3 = vsel %vm1464_vm7, %v1452_v39, %v976_v14 }
 0x207   : > { %1292 = vrot.lane.b32.xlu1 %v932_v33, %s2689_s25 }
 0x208   : > { %1193 = vrot.lane.b32.xlu0 %v833_v40, %s2688_s17 }
 0x209   : > { %v4168_v8 = vpop.permute.xlu1 %977 }
 0x20a   : > { %v1275_v50 = vpop.permute.xlu0 %1274 }
 0x20b   : > { %v1583_v4 = vsel %vm1563_vm10, %v1550_v63, %v1275_v50  ;;  %995 = vrot.lane.b32.xlu1 %v932_v33, %s2686_s24  ;;  %v4849_v63 = vld [vmem:[#allocation69_spill] sm:$0xff] }
 0x20c   : > { %896 = vrot.lane.b32.xlu0 %v833_v40, %s2685_s15  ;;  %2480 = vmatmul.mubr.msk.f32.gmra.mxu1 %vm1601_vm11, %v1583_v4  ;;  %v1387_v50 = vsel %vm1365_vm4, %v1354_v10, %v4849_v63  ;;  %v1356_v10 = vsel %vm1332_vm3, %v3843_v47, %v4852_v59  ;;  %v4853_v63 = vld [vmem:[#allocation9_spill] sm:$0xff] }
 0x20d   : > { %v4176_v28 = vpop.permute.xlu1 %776  ;;  %v1420_v32 = vsel %vm1398_vm5, %v1387_v50, %v4140_v19  ;;  %v1389_v50 = vsel %vm1365_vm4, %v1356_v10, %v4853_v63 }
 0x20e   : > { %v1074_v5 = vpop.permute.xlu0 %1073  ;;  %v1453_v30 = vsel %vm1431_vm6, %v1420_v32, %v4161_v12 }
 0x20f   : > { %997 = vrot.lane.b32.xlu1 %v934_v43, %s2686_s24  ;;  %v1518_v16 = vsel %vm1497_vm8, %v1485_v3, %v1074_v5  ;;  %v1486_v53 = vsel %vm1464_vm7, %v1453_v30, %v4168_v8  ;;  %s2608_s24 = sshll.u32 %s2690_s21, 4  ;;  %s2609_s24 = int_to_ptr.vmem [resolvable:$false] %s2608_s24 }
 0x210   : > { %1294 = vrot.lane.b32.xlu0 %v934_v43, %s2689_s25  ;;  %s2610_s29 = scalar_lea.vmem %s2609_s24, 64 }
 0x211   : > { %v1176_v24 = vpop.permute.xlu1 %1175 }
 0x212   : > { %v1076_v37 = vpop.permute.xlu0 %1075  ;;  %v1551_v42 = vsel %vm1530_vm9, %v1518_v16, %v1176_v24 }
 0x213   : > { %1095 = vrot.lane.b32.xlu1 %v326_v20, %s2687_s9  ;;  %v1519_v24 = vsel %vm1497_vm8, %v1486_v53, %v1076_v37  ;;  %v2603_v37 = vld [vmem:[%s2784_s11 + $0x108] sm:$0xff]  ;;  %s253_s11 = sand.u32 1, %s2664_s19  }
 0x214   : > { %v2454_v55 = vpop.f32.mrf.mxu0  ;;  %1093 = vrot.lane.b32.xlu0 %v325_v2, %s2687_s9  ;;  %s4213_s9 = scalar_lea.vmem %s4624_s4, %s2404_s27  ;;  %s2361_s10 = sshll.u32 %s253_s11, 1 }
 0x215   : > { %v1935_v36 = vmul.f32 %v2454_v55, %v4186_v15  ;;  %v4205_v9 = vpop.permute.xlu1 %878  ;;  %s255_s13 = scalar_lea.vmem [#allocation2], %s2361_s10  ;;  %s2221_s15 = scalar_lea.sflag [#allocation3], %s253_s11 }
 0x216   : > { %v1768_v41 = vpop.f32.mrf.mxu0  ;;  %v4215_v61 = vpop.permute.xlu0 %778  ;;  %s2238_s16 = sshll.u32 %s255_s13, 4  ;;  %s2239_s16 = int_to_ptr.vmem [resolvable:$true] %s2238_s16 }
 0x217   : > { %v1974_v26 = vadd.f32 %v4198_v52, %v1935_v36  ;;  %v1934_v35 = vmul.f32 %v4186_v15, %v1768_v41  ;;  %1197 = vrot.lane.b32.xlu1 %v1134_v49, %s2688_s17  ;;  %v4850_v49 = vld [vmem:[#allocation52_spill] sm:$0xff]  ;;  %s2604_s27 = scalar_lea.vmem %s2239_s16, 32  ;;  %p2611_p1 = scmp.lt.s32.totalorder %s2239_s16, %s2609_s24 }
 0x218   : > { %1195 = vrot.lane.b32.xlu0 %v1132_v21, %s2688_s17  ;;  %v1355_v54 = vsel %vm1332_vm3, %v2603_v37, %v4850_v49  ;;  %p2605_p12 = scmp.ne.s32.totalorder %s2239_s16, %s2604_s27  ;;  %p2612_p2 = scmp.lt.s32.totalorder %s2610_s29, %s2604_s27 }
 0x219   : > { %v2075_v13 = vmul.f32 %v1974_v26, %v1974_v26  ;;  %2180 = vst.msk [vmem:[%s4213_s9 + $0x8] sm:$0xff] %vm1365_vm4, %v1974_v26  ;;  %v1973_v11 = vadd.f32 %v4198_v52, %v1934_v35  ;;  %v1277_v33 = vpop.permute.xlu1 %1276  ;;  %v2006_v40 = vsel %vm1365_vm4, %v1974_v26, 0.0  ;;  %v1388_v21 = vsel %vm1365_vm4, %v1355_v54, %v4851_v25 }
 0x21a   : > { %v1584_v27 = vsel %vm1563_vm10, %v1551_v42, %v1277_v33  ;;  %v1178_v14 = vpop.permute.xlu0 %1177  ;;  %v1421_v39 = vsel %vm1398_vm5, %v1388_v21, %v4176_v28  ;;  %p2606_p13 = pnand %p2605_p12, %p2761_p4  ;;  %p2613_p3 = por %p2612_p2, %p2611_p1 }
 0x21b   : > { %v2005_v22 = vsel %vm1365_vm4, %v1973_v11, 0.0  ;;  %v2074_v56 = vmul.f32 %v1973_v11, %v1973_v11  ;;  %2179 = vst.msk [vmem:[%s4213_s9] sm:$0xff] %vm1365_vm4, %v1973_v11  ;;  %1298 = vrot.lane.b32.xlu1 %v1235_v60, %s2689_s25  ;;  %2482 = vmatprep.mubr.msk.f32.mxu1 %vm1601_vm11, %v1584_v27  ;;  %v2107_v4 = vsel %vm1365_vm4, %v2075_v13, 0.0  ;;  %v1552_v45 = vsel %vm1530_vm9, %v1519_v24, %v1178_v14 }
 0x21c   : > { %v2007_v18 = vadd.f32 %v2006_v40, %v2005_v22  ;;  %1296 = vrot.lane.b32.xlu0 %v1233_v6, %s2689_s25  ;;  %v1454_v26 = vsel %vm1431_vm6, %v1421_v39, %v4205_v9  ;;  %p2607_p0 = pneg %p2606_p13 }
 0x21d   : > { %v2106_v43 = vsel %vm1365_vm4, %v2074_v56, 0.0  ;;  %v980_v20 = vpop.permute.xlu1 %979 }
 0x21e   : > { %v2108_v5 = vadd.f32 %v2107_v4, %v2106_v43  ;;  %v881_v2 = vpop.permute.xlu0 %880  ;;  %v1487_v16 = vsel %vm1464_vm7, %v1454_v26, %v980_v20  ;;  %v1422_v43 = vsel %vm1398_vm5, %v1389_v50, %v4215_v61  ;;  %p2614_p5 = pnand %p2613_p3, %p2607_p0 }
 0x21f   : > { %v1455_v32 = vsel %vm1431_vm6, %v1422_v43, %v881_v2 }
 0x221   : > { %v982_v34 = vpop.permute.xlu1 %981 }
 0x222   : > { %v1279_v58 = vpop.permute.xlu0 %1278 }
 0x223   : > { %v1585_v0 = vsel %vm1563_vm10, %v1552_v45, %v1279_v58 }
 0x224   : > { %2483 = vmatmul.mubr.msk.f32.gmra.mxu1 %vm1601_vm11, %v1585_v0 }
 0x225   : > { %v4254_v19 = vpop.permute.xlu1 %780 }
 0x226   : > { %v1078_v46 = vpop.permute.xlu0 %1077 }
 0x227   : > { %v1520_v28 = vsel %vm1497_vm8, %v1487_v16, %v1078_v46 }
 0x228   : > { %v2457_v38 = vpop.f32.mrf.mxu0 }
 0x229   : > { %v1937_v12 = vmul.f32 %v2457_v38, %v4186_v15  ;;  %v1180_v23 = vpop.permute.xlu1 %1179 }
 0x22a   : > { %v1778_v55 = vpop.f32.mrf.mxu0  ;;  %v1080_v8 = vpop.permute.xlu0 %1079  ;;  %v1553_v6 = vsel %vm1530_vm9, %v1520_v28, %v1180_v23 }
 0x22b   : > { %v1976_v17 = vadd.f32 %v4198_v52, %v1937_v12  ;;  %v1936_v36 = vmul.f32 %v4186_v15, %v1778_v55 }
 0x22d   : > { %2182 = vst.msk [vmem:[%s4213_s9 + $0x18] sm:$0xff] %vm1365_vm4, %v1976_v17  ;;  %v1975_v41 = vadd.f32 %v4198_v52, %v1936_v36  ;;  %v883_v3 = vpop.permute.xlu1 %882  ;;  %v2077_v60 = vmul.f32 %v1976_v17, %v1976_v17  ;;  %v2010_v33 = vsel %vm1365_vm4, %v1976_v17, 0.0  ;;  %v4855_v36 = vld [vmem:[#allocation72_spill] sm:$0xff] }
 0x22e   : > { %v4271_v35 = vpop.permute.xlu0 %782 }
 0x22f   : > { %v2008_v42 = vsel %vm1365_vm4, %v1975_v41, 0.0  ;;  %v2076_v13 = vmul.f32 %v1975_v41, %v1975_v41  ;;  %2181 = vst.msk [vmem:[%s4213_s9 + $0x10] sm:$0xff] %vm1365_vm4, %v1975_v41  ;;  %v2111_v29 = vsel %vm1365_vm4, %v2077_v60, 0.0 }
 0x230   : > { %v2009_v11 = vadd.f32 %v2008_v42, %v2007_v18 }
 0x231   : > { %v2109_v27 = vsel %vm1365_vm4, %v2076_v13, 0.0  ;;  %v1281_v9 = vpop.permute.xlu1 %1280 }
 0x232   : > { %v2110_v14 = vadd.f32 %v2109_v27, %v2108_v5  ;;  %v1586_v40 = vsel %vm1563_vm10, %v1553_v6, %v1281_v9  ;;  %v1182_v22 = vpop.permute.xlu0 %1181  ;;  %v2011_v56 = vadd.f32 %v2010_v33, %v2009_v11  ;;  %v1488_v5 = vsel %vm1464_vm7, %v1455_v32, %v982_v34 }
 0x233   : > { %2485 = vmatprep.mubr.msk.f32.mxu1 %vm1601_vm11, %v1586_v40  ;;  %v1521_v30 = vsel %vm1497_vm8, %v1488_v5, %v1080_v8  ;;  %v4854_v8 = vld [vmem:[#allocation54_spill] sm:$0xff] }
 0x234   : > { %v2112_v18 = vadd.f32 %v2111_v29, %v2110_v14  ;;  %v1554_v24 = vsel %vm1530_vm9, %v1521_v30, %v1182_v22  ;;  %v1357_v37 = vsel %vm1332_vm3, %v3886_v31, %v4854_v8  ;;  %v4857_v22 = vld [vmem:[#allocation8_spill] sm:$0xff] }
 0x235   : > { %v984_v4 = vpop.permute.xlu1 %983  ;;  %v1390_v25 = vsel %vm1365_vm4, %v1357_v37, %v4855_v36  ;;  %v4858_v37 = vld [vmem:[#allocation56_spill] sm:$0xff] }
 0x236   : > { %v885_v20 = vpop.permute.xlu0 %884  ;;  %v1423_v39 = vsel %vm1398_vm5, %v1390_v25, %v4254_v19 }
 0x237   : > { %v1456_v31 = vsel %vm1431_vm6, %v1423_v39, %v883_v3  ;;  %v4856_v3 = vld [vmem:[#allocation53_spill] sm:$0xff] }
 0x238   : > { %v1489_v28 = vsel %vm1464_vm7, %v1456_v31, %v984_v4  ;;  %v1358_v40 = vsel %vm1332_vm3, %v3905_v57, %v4856_v3 }
 0x239   : > { %v986_v53 = vpop.permute.xlu1 %985 }
 0x23a   : > { %v1283_v47 = vpop.permute.xlu0 %1282 }
 0x23b   : > { %v1587_v45 = vsel %vm1563_vm10, %v1554_v24, %v1283_v47 }
 0x23c   : > { %v2460_v58 = vpop.f32.mrf.mxu0  ;;  %2486 = vmatmul.mubr.msk.f32.gmra.mxu1 %vm1601_vm11, %v1587_v45 }
 0x23d   : > { %v1939_v61 = vmul.f32 %v2460_v58, %v4186_v15  ;;  %v4298_v0 = vpop.permute.xlu1 %784 }
 0x23e   : > { %v1788_v46 = vpop.f32.mrf.mxu0  ;;  %v1082_v2 = vpop.permute.xlu0 %1081 }
 0x23f   : > { %v1978_v34 = vadd.f32 %v4198_v52, %v1939_v61  ;;  %v1938_v38 = vmul.f32 %v4186_v15, %v1788_v46  ;;  %v1522_v33 = vsel %vm1497_vm8, %v1489_v28, %v1082_v2 }
 0x241   : > { %2184 = vst.msk [vmem:[%s4213_s9 + $0x28] sm:$0xff] %vm1365_vm4, %v1978_v34  ;;  %v1977_v12 = vadd.f32 %v4198_v52, %v1938_v38  ;;  %v1184_v23 = vpop.permute.xlu1 %1183  ;;  %v2079_v49 = vmul.f32 %v1978_v34, %v1978_v34  ;;  %v2014_v41 = vsel %vm1365_vm4, %v1978_v34, 0.0 }
 0x242   : > { %v1084_v55 = vpop.permute.xlu0 %1083  ;;  %v1555_v19 = vsel %vm1530_vm9, %v1522_v33, %v1184_v23  ;;  %v4860_v33 = vld [vmem:[#allocation55_spill] sm:$0xff] }
 0x243   : > { %v2012_v54 = vsel %vm1365_vm4, %v1977_v12, 0.0  ;;  %v2078_v17 = vmul.f32 %v1977_v12, %v1977_v12  ;;  %2183 = vst.msk [vmem:[%s4213_s9 + $0x20] sm:$0xff] %vm1365_vm4, %v1977_v12  ;;  %v2115_v11 = vsel %vm1365_vm4, %v2079_v49, 0.0  ;;  %v1359_v49 = vsel %vm1332_vm3, %v3951_v62, %v4858_v37 }
 0x244   : > { %v2013_v21 = vadd.f32 %v2012_v54, %v2011_v56  ;;  %v1391_v56 = vsel %vm1365_vm4, %v1358_v40, %v4857_v22 }
 0x245   : > { %v2113_v26 = vsel %vm1365_vm4, %v2078_v17, 0.0  ;;  %v887_v16 = vpop.permute.xlu1 %886  ;;  %v1424_v59 = vsel %vm1398_vm5, %v1391_v56, %v4271_v35  ;;  %v4859_v17 = vld [vmem:[#allocation74_spill] sm:$0xff] }
 0x246   : > { %v2114_v60 = vadd.f32 %v2113_v26, %v2112_v18  ;;  %v4318_v42 = vpop.permute.xlu0 %786  ;;  %v2015_v13 = vadd.f32 %v2014_v41, %v2013_v21  ;;  %v1457_v18 = vsel %vm1431_vm6, %v1424_v59, %v885_v20  ;;  %v1392_v36 = vsel %vm1365_vm4, %v1359_v49, %v4859_v17 }
 0x247   : > { %v1490_v63 = vsel %vm1464_vm7, %v1457_v18, %v986_v53  ;;  %v1425_v21 = vsel %vm1398_vm5, %v1392_v36, %v4298_v0  ;;  %v1360_v0 = vsel %vm1332_vm3, %v3964_v7, %v4860_v33 }
 0x248   : > { %v2116_v6 = vadd.f32 %v2115_v11, %v2114_v60  ;;  %v1523_v4 = vsel %vm1497_vm8, %v1490_v63, %v1084_v55  ;;  %v1458_v41 = vsel %vm1431_vm6, %v1425_v21, %v887_v16 }
 0x249   : > { %v1285_v27 = vpop.permute.xlu1 %1284 }
 0x24a   : > { %v1588_v9 = vsel %vm1563_vm10, %v1555_v19, %v1285_v27  ;;  %v1186_v14 = vpop.permute.xlu0 %1185 }
 0x24b   : > { %2488 = vmatprep.mubr.msk.f32.mxu1 %vm1601_vm11, %v1588_v9  ;;  %v1556_v32 = vsel %vm1530_vm9, %v1523_v4, %v1186_v14 }
 0x24d   : > { %v988_v29 = vpop.permute.xlu1 %987 }
 0x24e   : > { %v889_v10 = vpop.permute.xlu0 %888  ;;  %v1491_v31 = vsel %vm1464_vm7, %v1458_v41, %v988_v29 }
 0x250   : > { %v2463_v50 = vpop.f32.mrf.mxu0 }
 0x251   : > { %v1941_v43 = vmul.f32 %v2463_v50, %v4186_v15  ;;  %v990_v57 = vpop.permute.xlu1 %989 }
 0x252   : > { %v1798_v5 = vpop.f32.mrf.mxu0  ;;  %v1287_v30 = vpop.permute.xlu0 %1286 }
 0x253   : > { %v1980_v24 = vadd.f32 %v4198_v52, %v1941_v43  ;;  %v1940_v35 = vmul.f32 %v4186_v15, %v1798_v5  ;;  %v1589_v47 = vsel %vm1563_vm10, %v1556_v32, %v1287_v30 }
 0x254   : > { %2489 = vmatmul.mubr.msk.f32.gmra.mxu1 %vm1601_vm11, %v1589_v47 }
 0x255   : > { %2186 = vst.msk [vmem:[%s4213_s9 + $0x38] sm:$0xff] %vm1365_vm4, %v1980_v24  ;;  %v1979_v20 = vadd.f32 %v4198_v52, %v1940_v35  ;;  %v4345_v53 = vpop.permute.xlu1 %788  ;;  %v2081_v58 = vmul.f32 %v1980_v24, %v1980_v24  ;;  %v2018_v34 = vsel %vm1365_vm4, %v1980_v24, 0.0 }
 0x256   : > { %v1086_v45 = vpop.permute.xlu0 %1085 }
 0x257   : > { %v2016_v61 = vsel %vm1365_vm4, %v1979_v20, 0.0  ;;  %v2080_v46 = vmul.f32 %v1979_v20, %v1979_v20  ;;  %2185 = vst.msk [vmem:[%s4213_s9 + $0x30] sm:$0xff] %vm1365_vm4, %v1979_v20  ;;  %v2119_v54 = vsel %vm1365_vm4, %v2081_v58, 0.0  ;;  %v1524_v60 = vsel %vm1497_vm8, %v1491_v31, %v1086_v45 }
 0x258   : > { %v2017_v2 = vadd.f32 %v2016_v61, %v2015_v13 }
 0x259   : > { %v2117_v38 = vsel %vm1365_vm4, %v2080_v46, 0.0  ;;  %v1188_v12 = vpop.permute.xlu1 %1187 }
 0x25a   : > { %v2118_v23 = vadd.f32 %v2117_v38, %v2116_v6  ;;  %v1088_v55 = vpop.permute.xlu0 %1087  ;;  %v2019_v8 = vadd.f32 %v2018_v34, %v2017_v2  ;;  %v1557_v62 = vsel %vm1530_vm9, %v1524_v60, %v1188_v12  ;;  %v4861_v6 = vld [vmem:[#allocation73_spill] sm:$0xff]  ;;  %v4862_v2 = vld [vmem:[#allocation58_spill] sm:$0xff]  ;;  %v4863_v38 = vld [vmem:[#allocation76_spill] sm:$0xff] }
 0x25b   : > { %v1393_v19 = vsel %vm1365_vm4, %v1360_v0, %v4861_v6  ;;  %v1361_v34 = vsel %vm1332_vm3, %v4011_v1, %v4862_v2  ;;  %v4864_v60 = vld [vmem:[#allocation57_spill] sm:$0xff] }
 0x25c   : > { %v2120_v25 = vadd.f32 %v2119_v54, %v2118_v23  ;;  %v1426_v14 = vsel %vm1398_vm5, %v1393_v19, %v4318_v42  ;;  %v1394_v12 = vsel %vm1365_vm4, %v1361_v34, %v4863_v38 }
 0x25d   : > { %v891_v39 = vpop.permute.xlu1 %890  ;;  %v1459_v22 = vsel %vm1431_vm6, %v1426_v14, %v889_v10  ;;  %v1427_v23 = vsel %vm1398_vm5, %v1394_v12, %v4345_v53 }
 0x25e   : > { %v4361_v26 = vpop.permute.xlu0 %790  ;;  %v1492_v7 = vsel %vm1464_vm7, %v1459_v22, %v990_v57 }
 0x25f   : > { %v1525_v59 = vsel %vm1497_vm8, %v1492_v7, %v1088_v55 }
 0x261   : > { %v1289_v13 = vpop.permute.xlu1 %1288 }
 0x262   : > { %v1590_v28 = vsel %vm1563_vm10, %v1557_v62, %v1289_v13  ;;  %v1190_v11 = vpop.permute.xlu0 %1189  ;;  %v1362_v62 = vsel %vm1332_vm3, %v4026_v48, %v4864_v60  ;;  %v4865_v13 = vld [vmem:[#allocation75_spill] sm:$0xff] }
 0x263   : > { %2491 = vmatprep.mubr.msk.f32.mxu1 %vm1601_vm11, %v1590_v28  ;;  %v1558_v42 = vsel %vm1530_vm9, %v1525_v59, %v1190_v11  ;;  %v1395_v28 = vsel %vm1365_vm4, %v1362_v62, %v4865_v13 }
 0x264   : > { %v2466_v16 = vpop.f32.mrf.mxu0  ;;  %v1428_v0 = vsel %vm1398_vm5, %v1395_v28, %v4361_v26 }
 0x265   : > { %v1943_v27 = vmul.f32 %v2466_v16, %v4186_v15  ;;  %v992_v9 = vpop.permute.xlu1 %991 }
 0x266   : > { %v1808_v3 = vpop.f32.mrf.mxu0  ;;  %v893_v40 = vpop.permute.xlu0 %892 }
 0x267   : > { %v1982_v56 = vadd.f32 %v4198_v52, %v1943_v27  ;;  %v1942_v29 = vmul.f32 %v4186_v15, %v1808_v3  ;;  %v1461_v6 = vsel %vm1431_vm6, %v1428_v0, %v893_v40 }
 0x269   : > { %2188 = vst.msk [vmem:[%s4213_s9 + $0x48] sm:$0xff] %vm1365_vm4, %v1982_v56  ;;  %v1981_v18 = vadd.f32 %v4198_v52, %v1942_v29  ;;  %v994_v63 = vpop.permute.xlu1 %993  ;;  %v2083_v4 = vmul.f32 %v1982_v56, %v1982_v56  ;;  %v2022_v57 = vsel %vm1365_vm4, %v1982_v56, 0.0 }
 0x26a   : > { %v1291_v50 = vpop.permute.xlu0 %1290  ;;  %v1494_v48 = vsel %vm1464_vm7, %v1461_v6, %v994_v63 }
 0x26b   : > { %v2020_v43 = vsel %vm1365_vm4, %v1981_v18, 0.0  ;;  %v2082_v10 = vmul.f32 %v1981_v18, %v1981_v18  ;;  %2187 = vst.msk [vmem:[%s4213_s9 + $0x40] sm:$0xff] %vm1365_vm4, %v1981_v18  ;;  %v1591_v32 = vsel %vm1563_vm10, %v1558_v42, %v1291_v50  ;;  %v2123_v45 = vsel %vm1365_vm4, %v2083_v4, 0.0 }
 0x26c   : > { %v2021_v5 = vadd.f32 %v2020_v43, %v2019_v8  ;;  %2492 = vmatmul.mubr.msk.f32.gmra.mxu1 %vm1601_vm11, %v1591_v32  ;;  %v1460_v8 = vsel %vm1431_vm6, %v1427_v23, %v891_v39  ;;  %v4866_v43 = vld [vmem:[#allocation59_spill] sm:$0xff]  ;;  %v4867_v32 = vld [vmem:[#allocation60_spill] sm:$0xff] }
 0x26d   : > { %v2121_v30 = vsel %vm1365_vm4, %v2082_v10, 0.0  ;;  %v793_v24 = vpop.permute.xlu1 %792  ;;  %v1493_v49 = vsel %vm1464_vm7, %v1460_v8, %v992_v9  ;;  %v1364_v10 = vsel %vm1332_vm3, %v4087_v44, %v4866_v43 }
 0x26e   : > { %v2122_v35 = vadd.f32 %v2121_v30, %v2120_v25  ;;  %v1090_v47 = vpop.permute.xlu0 %1089  ;;  %v2023_v20 = vadd.f32 %v2022_v57, %v2021_v5  ;;  %v1363_v5 = vsel %vm1332_vm3, %v4071_v51, %v4867_v32  ;;  %v4868_v57 = vld [vmem:[#allocation77_spill] sm:$0xff] }
 0x26f   : > { %v1526_v54 = vsel %vm1497_vm8, %v1493_v49, %v1090_v47  ;;  %v1397_v30 = vsel %vm1365_vm4, %v1364_v10, %v4868_v57 }
 0x270   : > { %v2124_v58 = vadd.f32 %v2123_v45, %v2122_v35  ;;  %v4869_v35 = vld [vmem:[#allocation78_spill] sm:$0xff] }
 0x271   : > { %v1192_v61 = vpop.permute.xlu1 %1191  ;;  %v1396_v47 = vsel %vm1365_vm4, %v1363_v5, %v4869_v35 }
 0x272   : > { %v1092_v46 = vpop.permute.xlu0 %1091  ;;  %v1559_v36 = vsel %vm1530_vm9, %v1526_v54, %v1192_v61 }
 0x273   : > { %v1527_v3 = vsel %vm1497_vm8, %v1494_v48, %v1092_v46 }
 0x275   : > { %v895_v55 = vpop.permute.xlu1 %894 }
 0x276   : > { %v795_v37 = vpop.permute.xlu0 %794 }
 0x278   : > { %v2469_v17 = vpop.f32.mrf.mxu0 }
 0x279   : > { %v1945_v1 = vmul.f32 %v2469_v17, %v4186_v15  ;;  %v1293_v25 = vpop.permute.xlu1 %1292 }
 0x27a   : > { %v1592_v21 = vsel %vm1563_vm10, %v1559_v36, %v1293_v25  ;;  %v1818_v41 = vpop.f32.mrf.mxu0  ;;  %v1194_v53 = vpop.permute.xlu0 %1193 }
 0x27b   : > { %v1984_v31 = vadd.f32 %v4198_v52, %v1945_v1  ;;  %v1944_v39 = vmul.f32 %v4186_v15, %v1818_v41  ;;  %2494 = vmatprep.mubr.msk.f32.mxu1 %vm1601_vm11, %v1592_v21  ;;  %v1560_v7 = vsel %vm1530_vm9, %v1527_v3, %v1194_v53 }
 0x27d   : > { %2190 = vst.msk [vmem:[%s4213_s9 + $0x58] sm:$0xff] %vm1365_vm4, %v1984_v31  ;;  %v1983_v11 = vadd.f32 %v4198_v52, %v1944_v39  ;;  %v996_v33 = vpop.permute.xlu1 %995  ;;  %v2085_v19 = vmul.f32 %v1984_v31, %v1984_v31  ;;  %v2026_v22 = vsel %vm1365_vm4, %v1984_v31, 0.0 }
 0x27e   : > { %v897_v16 = vpop.permute.xlu0 %896 }
 0x27f   : > { %v2024_v27 = vsel %vm1365_vm4, %v1983_v11, 0.0  ;;  %v2084_v9 = vmul.f32 %v1983_v11, %v1983_v11  ;;  %2189 = vst.msk [vmem:[%s4213_s9 + $0x50] sm:$0xff] %vm1365_vm4, %v1983_v11  ;;  %v2127_v18 = vsel %vm1365_vm4, %v2085_v19, 0.0 }
 0x280   : > { %v2025_v14 = vadd.f32 %v2024_v27, %v2023_v20  ;;  %v1430_v20 = vsel %vm1398_vm5, %v1397_v30, %v795_v37 }
 0x281   : > { %v2125_v56 = vsel %vm1365_vm4, %v2084_v9, 0.0  ;;  %v998_v29 = vpop.permute.xlu1 %997  ;;  %v1463_v61 = vsel %vm1431_vm6, %v1430_v20, %v897_v16 }
 0x282   : > { %v2126_v26 = vadd.f32 %v2125_v56, %v2124_v58  ;;  %v1295_v40 = vpop.permute.xlu0 %1294  ;;  %v2027_v59 = vadd.f32 %v2026_v22, %v2025_v14  ;;  %v1429_v58 = vsel %vm1398_vm5, %v1396_v47, %v793_v24  ;;  %v1496_v2 = vsel %vm1464_vm7, %v1463_v61, %v998_v29 }
 0x283   : > { %v1593_v42 = vsel %vm1563_vm10, %v1560_v7, %v1295_v40  ;;  %v1462_v44 = vsel %vm1431_vm6, %v1429_v58, %v895_v55 }
 0x284   : > { %2495 = vmatmul.mubr.msk.f32.gmra.mxu1 %vm1601_vm11, %v1593_v42  ;;  %v2128_v63 = vadd.f32 %v2127_v18, %v2126_v26  ;;  %v1495_v51 = vsel %vm1464_vm7, %v1462_v44, %v996_v33 }
 0x285   : > { %v1096_v50 = vpop.permute.xlu1 %1095 }
 0x286   : > { %v1094_v4 = vpop.permute.xlu0 %1093  ;;  %v1529_v34 = vsel %vm1497_vm8, %v1496_v2, %v1096_v50 }
 0x287   : > { %v1528_v12 = vsel %vm1497_vm8, %v1495_v51, %v1094_v4 }
 0x289   : > { %v1198_v45 = vpop.permute.xlu1 %1197 }
 0x28a   : > { %v1196_v46 = vpop.permute.xlu0 %1195  ;;  %v1562_v23 = vsel %vm1530_vm9, %v1529_v34, %v1198_v45 }
 0x28b   : > { %v1561_v37 = vsel %vm1530_vm9, %v1528_v12, %v1196_v46 }
 0x28c   : > { %v2472_v38 = vpop.f32.mrf.mxu0 }
 0x28d   : > { %v1947_v8 = vmul.f32 %v2472_v38, %v4186_v15  ;;  %v1299_v24 = vpop.permute.xlu1 %1298 }
 0x28e   : > { %v1595_v55 = vsel %vm1563_vm10, %v1562_v23, %v1299_v24  ;;  %v1828_v49 = vpop.f32.mrf.mxu0  ;;  %v1297_v54 = vpop.permute.xlu0 %1296 }
 0x28f   : > { %v1986_v17 = vadd.f32 %v4198_v52, %v1947_v8  ;;  %v1946_v36 = vmul.f32 %v4186_v15, %v1828_v49  ;;  %v1594_v1 = vsel %vm1563_vm10, %v1561_v37, %v1297_v54 }
 0x290   : > { %2497 = vmatprep.mubr.msk.f32.mxu1 %vm1601_vm11, %v1594_v1 }
 0x291   : > { %2192 = vst.msk [vmem:[%s4213_s9 + $0x68] sm:$0xff] %vm1365_vm4, %v1986_v17  ;;  %v1985_v25 = vadd.f32 %v4198_v52, %v1946_v36  ;;  %2498 = vmatmul.mubr.msk.f32.gmra.mxu1 %vm1601_vm11, %v1595_v55  ;;  %v2087_v21 = vmul.f32 %v1986_v17, %v1986_v17  ;;  %v2030_v39 = vsel %vm1365_vm4, %v1986_v17, 0.0 }
 0x293   : > { %v2028_v41 = vsel %vm1365_vm4, %v1985_v25, 0.0  ;;  %v2086_v53 = vmul.f32 %v1985_v25, %v1985_v25  ;;  %2191 = vst.msk [vmem:[%s4213_s9 + $0x60] sm:$0xff] %vm1365_vm4, %v1985_v25  ;;  %v2131_v28 = vsel %vm1365_vm4, %v2087_v21, 0.0 }
 0x294   : > { %v2029_v31 = vadd.f32 %v2028_v41, %v2027_v59 }
 0x295   : > { %v2129_v60 = vsel %vm1365_vm4, %v2086_v53, 0.0 }
 0x296   : > { %v2130_v62 = vadd.f32 %v2129_v60, %v2128_v63  ;;  %v2031_v13 = vadd.f32 %v2030_v39, %v2029_v31 }
 0x298   : > { %v2132_v11 = vadd.f32 %v2131_v28, %v2130_v62 }
 0x2a0   : > { %v2475_v33 = vpop.f32.mrf.mxu0 }
 0x2a1   : > { %v1949_v0 = vmul.f32 %v2475_v33, %v4186_v15 }
 0x2a2   : > { %v1838_v16 = vpop.f32.mrf.mxu0 }
 0x2a3   : > { %v1988_v6 = vadd.f32 %v4198_v52, %v1949_v0  ;;  %v1948_v19 = vmul.f32 %v4186_v15, %v1838_v16 }
 0x2a5   : > { %2194 = vst.msk [vmem:[%s4213_s9 + $0x78] sm:$0xff] %vm1365_vm4, %v1988_v6  ;;  %v1987_v27 = vadd.f32 %v4198_v52, %v1948_v19  ;;  %v2089_v9 = vmul.f32 %v1988_v6, %v1988_v6  ;;  %v2034_v22 = vsel %vm1365_vm4, %v1988_v6, 0.0 }
 0x2a7   : > { %v2032_v48 = vsel %vm1365_vm4, %v1987_v27, 0.0  ;;  %v2088_v14 = vmul.f32 %v1987_v27, %v1987_v27  ;;  %2193 = vst.msk [vmem:[%s4213_s9 + $0x70] sm:$0xff] %vm1365_vm4, %v1987_v27  ;;  %v2135_v7 = vsel %vm1365_vm4, %v2089_v9, 0.0 }
 0x2a8   : > { %v2033_v3 = vadd.f32 %v2032_v48, %v2031_v13 }
 0x2a9   : > { %v2133_v56 = vsel %vm1365_vm4, %v2088_v14, 0.0 }
 0x2aa   : > { %v2134_v29 = vadd.f32 %v2133_v56, %v2132_v11  ;;  %v2035_v26 = vadd.f32 %v2034_v22, %v2033_v3 }
 0x2ac   : > { %v2136_v40 = vadd.f32 %v2135_v7, %v2134_v29 }
 0x2b4   : > { %v2478_v59 = vpop.f32.mrf.mxu1 }
 0x2b5   : > { %v1951_v18 = vmul.f32 %v2478_v59, %v4186_v15 }
 0x2b6   : > { %v1848_v42 = vpop.f32.mrf.mxu1 }
 0x2b7   : > { %v1990_v63 = vadd.f32 %v4198_v52, %v1951_v18  ;;  %v1950_v50 = vmul.f32 %v4186_v15, %v1848_v42 }
 0x2b9   : > { %2196 = vst.msk [vmem:[%s4213_s9 + $0x88] sm:$0xff] %vm1365_vm4, %v1990_v63  ;;  %v1989_v4 = vadd.f32 %v4198_v52, %v1950_v50  ;;  %v2091_v43 = vmul.f32 %v1990_v63, %v1990_v63  ;;  %v2038_v57 = vsel %vm1365_vm4, %v1990_v63, 0.0 }
 0x2bb   : > { %v2036_v10 = vsel %vm1365_vm4, %v1989_v4, 0.0  ;;  %v2090_v32 = vmul.f32 %v1989_v4, %v1989_v4  ;;  %2195 = vst.msk [vmem:[%s4213_s9 + $0x80] sm:$0xff] %vm1365_vm4, %v1989_v4  ;;  %v2139_v20 = vsel %vm1365_vm4, %v2091_v43, 0.0 }
 0x2bc   : > { %v2037_v5 = vadd.f32 %v2036_v10, %v2035_v26 }
 0x2bd   : > { %v2137_v30 = vsel %vm1365_vm4, %v2090_v32, 0.0 }
 0x2be   : > { %v2138_v35 = vadd.f32 %v2137_v30, %v2136_v40  ;;  %v2039_v47 = vadd.f32 %v2038_v57, %v2037_v5 }
 0x2c0   : > { %v2140_v45 = vadd.f32 %v2139_v20, %v2138_v35 }
 0x2cc   : > { %v2481_v58 = vpop.f32.mrf.mxu1 }
 0x2cd   : > { %v1953_v61 = vmul.f32 %v2481_v58, %v4186_v15 }
 0x2ce   : > { %v1858_v46 = vpop.f32.mrf.mxu1 }
 0x2cf   : > { %v1992_v44 = vadd.f32 %v4198_v52, %v1953_v61  ;;  %v1952_v2 = vmul.f32 %v4186_v15, %v1858_v46 }
 0x2d1   : > { %2198 = vst.msk [vmem:[%s4213_s9 + $0x98] sm:$0xff] %vm1365_vm4, %v1992_v44  ;;  %v1991_v51 = vadd.f32 %v4198_v52, %v1952_v2  ;;  %v2093_v34 = vmul.f32 %v1992_v44, %v1992_v44  ;;  %v2042_v8 = vsel %vm1365_vm4, %v1992_v44, 0.0 }
 0x2d3   : > { %v2040_v38 = vsel %vm1365_vm4, %v1991_v51, 0.0  ;;  %v2092_v12 = vmul.f32 %v1991_v51, %v1991_v51  ;;  %2197 = vst.msk [vmem:[%s4213_s9 + $0x90] sm:$0xff] %vm1365_vm4, %v1991_v51  ;;  %v2143_v49 = vsel %vm1365_vm4, %v2093_v34, 0.0 }
 0x2d4   : > { %v2041_v23 = vadd.f32 %v2040_v38, %v2039_v47 }
 0x2d5   : > { %v2141_v24 = vsel %vm1365_vm4, %v2092_v12, 0.0 }
 0x2d6   : > { %v2142_v37 = vadd.f32 %v2141_v24, %v2140_v45  ;;  %v2043_v55 = vadd.f32 %v2042_v8, %v2041_v23 }
 0x2d8   : > { %v2144_v54 = vadd.f32 %v2143_v49, %v2142_v37 }
 0x2e4   : > { %v2484_v17 = vpop.f32.mrf.mxu1 }
 0x2e5   : > { %v1955_v36 = vmul.f32 %v2484_v17, %v4186_v15 }
 0x2e6   : > { %v1868_v1 = vpop.f32.mrf.mxu1 }
 0x2e7   : > { %v1994_v25 = vadd.f32 %v4198_v52, %v1955_v36  ;;  %v1954_v21 = vmul.f32 %v4186_v15, %v1868_v1 }
 0x2e9   : > { %2200 = vst.msk [vmem:[%s4213_s9 + $0xa8] sm:$0xff] %vm1365_vm4, %v1994_v25  ;;  %v1993_v41 = vadd.f32 %v4198_v52, %v1954_v21  ;;  %v2095_v53 = vmul.f32 %v1994_v25, %v1994_v25  ;;  %v2046_v62 = vsel %vm1365_vm4, %v1994_v25, 0.0 }
 0x2eb   : > { %v2044_v31 = vsel %vm1365_vm4, %v1993_v41, 0.0  ;;  %v2094_v39 = vmul.f32 %v1993_v41, %v1993_v41  ;;  %2199 = vst.msk [vmem:[%s4213_s9 + $0xa0] sm:$0xff] %vm1365_vm4, %v1993_v41  ;;  %v2147_v33 = vsel %vm1365_vm4, %v2095_v53, 0.0 }
 0x2ec   : > { %v2045_v60 = vadd.f32 %v2044_v31, %v2043_v55 }
 0x2ed   : > { %v2145_v13 = vsel %vm1365_vm4, %v2094_v39, 0.0 }
 0x2ee   : > { %v2146_v28 = vadd.f32 %v2145_v13, %v2144_v54  ;;  %v2047_v11 = vadd.f32 %v2046_v62, %v2045_v60 }
 0x2f0   : > { %v2148_v0 = vadd.f32 %v2147_v33, %v2146_v28 }
 0x2fc   : > { %v2487_v16 = vpop.f32.mrf.mxu1 }
 0x2fd   : > { %v1957_v6 = vmul.f32 %v2487_v16, %v4186_v15 }
 0x2fe   : > { %v1878_v19 = vpop.f32.mrf.mxu1 }
 0x2ff   : > { %v1996_v27 = vadd.f32 %v4198_v52, %v1957_v6  ;;  %v1956_v9 = vmul.f32 %v4186_v15, %v1878_v19 }
 0x301   : > { %2202 = vst.msk [vmem:[%s4213_s9 + $0xb8] sm:$0xff] %vm1365_vm4, %v1996_v27  ;;  %v1995_v48 = vadd.f32 %v4198_v52, %v1956_v9  ;;  %v2097_v14 = vmul.f32 %v1996_v27, %v1996_v27  ;;  %v2050_v29 = vsel %vm1365_vm4, %v1996_v27, 0.0 }
 0x303   : > { %v2048_v3 = vsel %vm1365_vm4, %v1995_v48, 0.0  ;;  %v2096_v22 = vmul.f32 %v1995_v48, %v1995_v48  ;;  %2201 = vst.msk [vmem:[%s4213_s9 + $0xb0] sm:$0xff] %vm1365_vm4, %v1995_v48  ;;  %v2151_v59 = vsel %vm1365_vm4, %v2097_v14, 0.0 }
 0x304   : > { %v2049_v56 = vadd.f32 %v2048_v3, %v2047_v11 }
 0x305   : > { %v2149_v26 = vsel %vm1365_vm4, %v2096_v22, 0.0 }
 0x306   : > { %v2150_v7 = vadd.f32 %v2149_v26, %v2148_v0  ;;  %v2051_v40 = vadd.f32 %v2050_v29, %v2049_v56 }
 0x308   : > { %v2152_v18 = vadd.f32 %v2151_v59, %v2150_v7 }
 0x314   : > { %v2490_v42 = vpop.f32.mrf.mxu1 }
 0x315   : > { %v1959_v63 = vmul.f32 %v2490_v42, %v4186_v15 }
 0x316   : > { %v1888_v50 = vpop.f32.mrf.mxu1 }
 0x317   : > { %v1998_v4 = vadd.f32 %v4198_v52, %v1959_v63  ;;  %v1958_v43 = vmul.f32 %v4186_v15, %v1888_v50 }
 0x319   : > { %2204 = vst.msk [vmem:[%s4213_s9 + $0xc8] sm:$0xff] %vm1365_vm4, %v1998_v4  ;;  %v1997_v10 = vadd.f32 %v4198_v52, %v1958_v43  ;;  %v2099_v38 = vmul.f32 %v1998_v4, %v1998_v4  ;;  %v2054_v24 = vsel %vm1365_vm4, %v1998_v4, 0.0 }
 0x31b   : > { %2203 = vst.msk [vmem:[%s4213_s9 + $0xc0] sm:$0xff] %vm1365_vm4, %v1997_v10  ;;  %v2098_v20 = vmul.f32 %v1997_v10, %v1997_v10  ;;  %v2052_v45 = vsel %vm1365_vm4, %v1997_v10, 0.0  ;;  %v2155_v49 = vsel %vm1365_vm4, %v2099_v38, 0.0 }
 0x31c   : > { %v2053_v2 = vadd.f32 %v2052_v45, %v2051_v40 }
 0x31d   : > { %v2153_v46 = vsel %vm1365_vm4, %v2098_v20, 0.0 }
 0x31e   : > { %v2154_v23 = vadd.f32 %v2153_v46, %v2152_v18  ;;  %v2055_v55 = vadd.f32 %v2054_v24, %v2053_v2 }
 0x320   : > { %v2156_v36 = vadd.f32 %v2155_v49, %v2154_v23 }
 0x32c   : > { %v2493_v32 = vpop.f32.mrf.mxu1 }
 0x32d   : > { %v1961_v5 = vmul.f32 %v2493_v32, %v4186_v15 }
 0x32e   : > { %v1898_v57 = vpop.f32.mrf.mxu1 }
 0x32f   : > { %v2000_v30 = vadd.f32 %v4198_v52, %v1961_v5  ;;  %v1960_v35 = vmul.f32 %v4186_v15, %v1898_v57 }
 0x331   : > { %2206 = vst.msk [vmem:[%s4213_s9 + $0xd8] sm:$0xff] %vm1365_vm4, %v2000_v30  ;;  %v1999_v47 = vadd.f32 %v4198_v52, %v1960_v35  ;;  %v2101_v1 = vmul.f32 %v2000_v30, %v2000_v30  ;;  %v2058_v41 = vsel %vm1365_vm4, %v2000_v30, 0.0 }
 0x333   : > { %2205 = vst.msk [vmem:[%s4213_s9 + $0xd0] sm:$0xff] %vm1365_vm4, %v1999_v47  ;;  %v2100_v12 = vmul.f32 %v1999_v47, %v1999_v47  ;;  %v2056_v37 = vsel %vm1365_vm4, %v1999_v47, 0.0  ;;  %v2159_v60 = vsel %vm1365_vm4, %v2101_v1, 0.0 }
 0x334   : > { %v2057_v17 = vadd.f32 %v2056_v37, %v2055_v55 }
 0x335   : > { %v2157_v54 = vsel %vm1365_vm4, %v2100_v12, 0.0 }
 0x336   : > { %v2158_v21 = vadd.f32 %v2157_v54, %v2156_v36  ;;  %v2059_v31 = vadd.f32 %v2058_v41, %v2057_v17 }
 0x338   : > { %v2160_v11 = vadd.f32 %v2159_v60, %v2158_v21 }
 0x344   : > { %v2496_v58 = vpop.f32.mrf.mxu1 }
 0x345   : > { %v1963_v61 = vmul.f32 %v2496_v58, %v4186_v15 }
 0x346   : > { %v1908_v44 = vpop.f32.mrf.mxu1 }
 0x347   : > { %v2002_v51 = vadd.f32 %v4198_v52, %v1963_v61  ;;  %v1962_v34 = vmul.f32 %v4186_v15, %v1908_v44 }
 0x349   : > { %2208 = vst.msk [vmem:[%s4213_s9 + $0xe8] sm:$0xff] %vm1365_vm4, %v2002_v51  ;;  %v2001_v8 = vadd.f32 %v4198_v52, %v1962_v34  ;;  %v2103_v0 = vmul.f32 %v2002_v51, %v2002_v51  ;;  %v2062_v27 = vsel %vm1365_vm4, %v2002_v51, 0.0 }
 0x34b   : > { %2207 = vst.msk [vmem:[%s4213_s9 + $0xe0] sm:$0xff] %vm1365_vm4, %v2001_v8  ;;  %v2102_v25 = vmul.f32 %v2001_v8, %v2001_v8  ;;  %v2060_v53 = vsel %vm1365_vm4, %v2001_v8, 0.0  ;;  %v2163_v14 = vsel %vm1365_vm4, %v2103_v0, 0.0 }
 0x34c   : > { %v2061_v28 = vadd.f32 %v2060_v53, %v2059_v31 }
 0x34d   : > { %v2161_v62 = vsel %vm1365_vm4, %v2102_v25, 0.0 }
 0x34e   : > { %v2162_v19 = vadd.f32 %v2161_v62, %v2160_v11  ;;  %v2063_v48 = vadd.f32 %v2062_v27, %v2061_v28 }
 0x350   : > { %v2164_v26 = vadd.f32 %v2163_v14, %v2162_v19 }
 0x351   : > { %v2499_v39 = vpop.f32.mrf.mxu1 }
 0x352   : > { %v1965_v13 = vmul.f32 %v2499_v39, %v4186_v15 }
 0x353   : > { %v1918_v33 = vpop.f32.mrf.mxu1 }
 0x354   : > { %v2004_v16 = vadd.f32 %v4198_v52, %v1965_v13  ;;  %v1964_v6 = vmul.f32 %v4186_v15, %v1918_v33 }
 0x356   : > { %2210 = vst.msk [vmem:[%s4213_s9 + $0xf8] sm:$0xff] %vm1365_vm4, %v2004_v16  ;;  %v2003_v9 = vadd.f32 %v4198_v52, %v1964_v6  ;;  %v2105_v3 = vmul.f32 %v2004_v16, %v2004_v16  ;;  %v2066_v15 = vsel %vm1365_vm4, %v2004_v16, 0.0 }
 0x358   : > { %v2064_v22 = vsel %vm1365_vm4, %v2003_v9, 0.0  ;;  %v2104_v56 = vmul.f32 %v2003_v9, %v2003_v9  ;;  %2209 = vst.msk [vmem:[%s4213_s9 + $0xf0] sm:$0xff] %vm1365_vm4, %v2003_v9  ;;  %v2167_v52 = vsel %vm1365_vm4, %v2105_v3, 0.0 }
 0x359   : > { %v2065_v29 = vadd.f32 %v2064_v22, %v2063_v48 }
 0x35a   : > { %v2165_v7 = vsel %vm1365_vm4, %v2104_v56, 0.0 }
 0x35b   : > { %v2067_v40 = vadd.f32 %v2066_v15, %v2065_v29  ;;  %v2166_v59 = vadd.f32 %v2165_v7, %v2164_v26 }
 0x35d   : > { %v2068_v18 = vrot.slane %v2067_v40, 4  ;;  %v2168_v42 = vadd.f32 %v2167_v52, %v2166_v59 }
 0x35f   : > { %v2069_v63 = vadd.f32 %v2068_v18, %v2067_v40  ;;  %v2169_v50 = vrot.slane %v2168_v42, 4 }
 0x361   : > { %v2070_v4 = vrot.slane %v2069_v63, 2  ;;  %v2170_v43 = vadd.f32 %v2169_v50, %v2168_v42 }
 0x363   : > { %v2071_v10 = vadd.f32 %v2070_v4, %v2069_v63  ;;  %v2171_v32 = vrot.slane %v2170_v43, 2 }
 0x365   : > { %v2072_v5 = vrot.slane %v2071_v10, 1  ;;  %v2172_v57 = vadd.f32 %v2171_v32, %v2170_v43 }
 0x367   : > { %v2173_v30 = vrot.slane %v2172_v57, 1  ;;  %v2073_v35 = vadd.f32 %v2072_v5, %v2071_v10 }
 0x369   : > { %v2174_v47 = vadd.f32 %v2173_v30, %v2172_v57 }
 0x36b   : > { %v2176_v20 = vsel %vm2175_vm12, %v2073_v35, %v2174_v47 }
 0x36c   : > { %2178 = vst.msk [vmem:[%s255_s13] sm:$0x3] %vm2177_vm13, %v2176_v20 }
 0x36d   : > { %2617 = shalt.err (!%p2614_p5)
}
 0x36e   : > { %s2618_s7 = scalar_lea.hbm %s4580_s14, 32  ;;  %s2622_s11 = scalar_lea.hbm %s4625_s5, 128 }
 0x36f   : > { %p2619_p6 = scmp.ne.s32.totalorder %s4580_s14, %s2618_s7  ;;  %p2623_p10 = scmp.lt.s32.totalorder %s4580_s14, %s4625_s5 }
 0x370   : > { %p2624_p11 = scmp.lt.s32.totalorder %s2622_s11, %s2618_s7 }
 0x371   : > { %p2620_p7 = pnand %p2619_p6, %p2761_p4 }
 0x372   : > { %p2625_p12 = por %p2624_p11, %p2623_p10 }
 0x373   : > { %p2621_p9 = pneg %p2620_p7 }
 0x375   : > { %p2626_p13 = pnand %p2625_p12, %p2621_p9 }
 0x377   : > { %2629 = shalt.err (!%p2626_p13)
}
 0x378   : > { %2511 = dma.vmem_to_hbm [thread:$0]  (%p2761_p4), %s2239_s16, 32, %s4580_s14, %s2221_s15  }
 0x379 PF: > { %p2517_p0 = scmp.ge.s32.totalorder %s2680_s23, 2  ;;  %s2262_s13 = sand.u32 1, %s2660_s18  }
 0x37a   : > { %s2263_s17 = scalar_lea.sflag [#allocation3], %s2262_s13 }
 0x37b   : > { %p2514_p1 = pnand %p2517_p0, %p2768_p8 }
 0x37d   : > { %p2515_p2 = pneg %p2514_p1 }
 0x37f   : > { %2655 = dma.done.wait (%p2515_p2), %s2263_s17, 32  }
 0x380   : > { %2657 = vsyncadd (%p2515_p2), %s2263_s17, 4294967264  ;;  %s19_s23 = sadd.s32 1, %s2680_s23   ;;  %s4870_s18 = smov %s2664_s19 }
 0x381   : > { %p16_p3 = scmp.ge.s32.totalorder %s19_s23, 6   ;;  %s4871_s19 = smov %s2668_s20 }
 0x382   : > { %s4872_s20 = smov %s2774_s6  ;;  %s4873_s21 = smov %s2676_s22 }
 0x383   : > { %s4874_s22 = smov %s4876_s26  ;;  %18 = sbr.rel (!%p16_p3) target bundleno = 4 (0x4), region = 83 }
 0x388   :  { %2268 = vsyncpa [#allocation3], 1 }
 0x389   :  { %2270 = vsyncpa [#allocation3 + $0x1], 1 }

</bundles_post_ra>
